<compile_context>
chip_gen: v7x
topology: tpu7x:2x2x1
jax: 0.10.0
libtpu: 0.0.40
codegen_flags: <defaults>
</compile_context>

<pallas_src>
import functools

import numpy as np
import jax
import jax.numpy as jnp
from jax import lax
from jax.experimental import pallas as pl
from jax.experimental.pallas import tpu as pltpu

LANE = 128  # one pooled-output lane block


# ---------------------------------------------------------------------------
# Pallas kernels
# ---------------------------------------------------------------------------
def _conv_relu_pool_kernel(y_ref, w_ref, bias_ref, o_ref, *, hh):
    """Fused 3x3 conv + bias + ReLU + 2x2 maxpool for one image.

    y_ref    : (1, hh+1, 2*Win)   bf16  padded input, rows paired along lanes
    w_ref    : (2, 2*Win, 4*LANE) bf16  row-pair conv matrices (built at init)
    bias_ref : (1, 4*LANE)        f32
    o_ref    : (1, hh, LANE)      bf16  pooled output (lane-dense; zero lanes
                                        already form layer-2's spatial padding)
    """
    acc = jnp.dot(y_ref[0, 0:hh, :], w_ref[0],
                  preferred_element_type=jnp.float32)
    acc = acc + jnp.dot(y_ref[0, 1:hh + 1, :], w_ref[1],
                        preferred_element_type=jnp.float32)
    acc = jnp.maximum(acc + bias_ref[...], 0.0)                 # (hh, 4*LANE)
    # 2x2 maxpool == max over the four aligned 128-lane blocks
    pooled = jnp.maximum(
        jnp.maximum(acc[:, 0:LANE], acc[:, LANE:2 * LANE]),
        jnp.maximum(acc[:, 2 * LANE:3 * LANE], acc[:, 3 * LANE:4 * LANE]))
    o_ref[...] = pooled[None].astype(o_ref.dtype)


def _conv_relu_pool_fc_kernel(y_ref, w_ref, bias_ref, wfc_ref, bfc_ref, o_ref,
                              *, hh):
    """Same as above plus the final Linear fused on the pooled activations.

    wfc_ref : (hh, LANE, classes) f32  FC weight, pre-permuted to pooled layout
    bfc_ref : (1, classes)        f32
    o_ref   : (1, 1, classes)     f32  logits
    """
    acc = jnp.dot(y_ref[0, 0:hh, :], w_ref[0],
                  preferred_element_type=jnp.float32)
    acc = acc + jnp.dot(y_ref[0, 1:hh + 1, :], w_ref[1],
                        preferred_element_type=jnp.float32)
    acc = jnp.maximum(acc + bias_ref[...], 0.0)
    pooled = jnp.maximum(
        jnp.maximum(acc[:, 0:LANE], acc[:, LANE:2 * LANE]),
        jnp.maximum(acc[:, 2 * LANE:3 * LANE], acc[:, 3 * LANE:4 * LANE]))
    logits = bfc_ref[...]                                        # (1, classes)
    for h in range(hh):                                          # tiny unrolled FC
        logits = logits + jnp.dot(pooled[h:h + 1, :], wfc_ref[h],
                                  preferred_element_type=jnp.float32)
    o_ref[...] = logits[None].astype(o_ref.dtype)


# ---------------------------------------------------------------------------
# pallas_call wrappers
# ---------------------------------------------------------------------------
def conv_relu_pool(y, w, bias, *, hh):
    n, hp, win2 = y.shape
    kern = functools.partial(_conv_relu_pool_kernel, hh=hh)
    return pl.pallas_call(
        kern,
        out_shape=jax.ShapeDtypeStruct((n, hh, LANE), jnp.bfloat16),
        grid=(n,),
        in_specs=[
            pl.BlockSpec((1, hp, win2), lambda i: (i, 0, 0)),
            pl.BlockSpec(w.shape, lambda i: (0, 0, 0)),
            pl.BlockSpec(bias.shape, lambda i: (0, 0)),
        ],
        out_specs=pl.BlockSpec((1, hh, LANE), lambda i: (i, 0, 0)),
        compiler_params=pltpu.CompilerParams(
            dimension_semantics=("parallel",)),
    )(y, w, bias)


def conv_relu_pool_fc(y, w, bias, wfc, bfc, *, hh):
    n, hp, win2 = y.shape
    classes = bfc.shape[-1]
    kern = functools.partial(_conv_relu_pool_fc_kernel, hh=hh)
    return pl.pallas_call(
        kern,
        out_shape=jax.ShapeDtypeStruct((n, 1, classes), jnp.float32),
        grid=(n,),
        in_specs=[
            pl.BlockSpec((1, hp, win2), lambda i: (i, 0, 0)),
            pl.BlockSpec(w.shape, lambda i: (0, 0, 0)),
            pl.BlockSpec(bias.shape, lambda i: (0, 0)),
            pl.BlockSpec(wfc.shape, lambda i: (0, 0, 0)),
            pl.BlockSpec(bfc.shape, lambda i: (0, 0)),
        ],
        out_specs=pl.BlockSpec((1, 1, classes), lambda i: (i, 0, 0)),
        compiler_params=pltpu.CompilerParams(
            dimension_semantics=("parallel",)),
    )(y, w, bias, wfc, bfc)


# ---------------------------------------------------------------------------
# Init-time weight preparation (all reshuffles hoisted out of the forward pass)
# ---------------------------------------------------------------------------
def _build_fused_conv_weights(k_oihw, bias, width, data_off):
    """Build the row-pair conv matrices B (2, 2*Win, 4*LANE) and bias row."""
    k = np.asarray(k_oihw, np.float32)           # (Cout, Cin, 3, 3) torch layout
    b = np.asarray(bias, np.float32)
    cout, cin = k.shape[0], k.shape[1]
    win = (width + 2) * cin
    assert 2 * data_off + (width // 2) * cout <= LANE
    a = np.zeros((3, win, 2 * LANE), np.float32)        # per-dh conv matrices
    brow = np.zeros((2 * LANE,), np.float32)
    for w in range(width):
        # even/odd output columns go to separate 128-lane blocks (for the pool)
        j0 = (w % 2) * LANE + data_off + (w // 2) * cout
        brow[j0:j0 + cout] = b
        for dh in range(3):
            for dw in range(3):
                i0 = (w + dw) * cin
                a[dh, i0:i0 + cin, j0:j0 + cout] = k[:, :, dh, dw].T
    bmat = np.zeros((2, 2 * win, 4 * LANE), np.float32)
    bmat[0, :win, 0:2 * LANE] = a[0]
    bmat[0, win:, 0:2 * LANE] = a[1]
    bmat[0, win:, 2 * LANE:] = a[0]
    bmat[1, :win, 0:2 * LANE] = a[2]
    bmat[1, :win, 2 * LANE:] = a[1]
    bmat[1, win:, 2 * LANE:] = a[2]
    bias_row = np.concatenate([brow, brow]).reshape(1, 4 * LANE)
    return bmat, bias_row


def prepare_params(params):
    c1 = params["w1"].shape[0]                   # 8  (= layer-2 Cin)
    c2 = params["w2"].shape[0]                   # 16
    b1_mat, bias1 = _build_fused_conv_weights(params["w1"], params["b1"],
                                              width=28, data_off=c1)
    b2_mat, bias2 = _build_fused_conv_weights(params["w2"], params["b2"],
                                              width=14, data_off=0)
    wfc = np.asarray(params["wfc"], np.float32)  # (classes, c2*7*7), (c,h,w)
    classes = wfc.shape[0]
    assert wfc.shape[1] == c2 * 7 * 7
    wfc_prep = np.zeros((7, LANE, classes), np.float32)
    wfc_prep[:, :7 * c2, :] = (wfc.reshape(classes, c2, 7, 7)
                               .transpose(2, 3, 1, 0)
                               .reshape(7, 7 * c2, classes))
    bfc = np.asarray(params["bfc"], np.float32).reshape(1, classes)
    return {
        "B1": jnp.asarray(b1_mat, jnp.bfloat16),
        "bias1": jnp.asarray(bias1, jnp.float32),
        "B2": jnp.asarray(b2_mat, jnp.bfloat16),
        "bias2": jnp.asarray(bias2, jnp.float32),
        "wfc": jnp.asarray(wfc_prep, jnp.float32),
        "bfc": jnp.asarray(bfc, jnp.float32),
    }


# ---------------------------------------------------------------------------
# Model (CNN.forward)
# ---------------------------------------------------------------------------
def init_params(key, input_size=1, class_number=10):
    k1, k2, k3, k4, k5, k6 = jax.random.split(key, 6)
    return {
        "w1": 0.1 * jax.random.normal(k1, (8, input_size, 3, 3), jnp.float32),
        "b1": 0.1 * jax.random.normal(k2, (8,), jnp.float32),
        "w2": 0.1 * jax.random.normal(k3, (16, 8, 3, 3), jnp.float32),
        "b2": 0.1 * jax.random.normal(k4, (16,), jnp.float32),
        "wfc": 0.05 * jax.random.normal(k5, (class_number, 16 * 7 * 7), jnp.float32),
        "bfc": 0.05 * jax.random.normal(k6, (class_number,), jnp.float32),
    }


def cnn_forward(x_nchw, prep):
    n, cin, h, w = x_nchw.shape
    # NCHW -> padded NHWC "row image" (h+2, (w+2)*cin), rows paired along lanes
    x2 = jnp.transpose(x_nchw, (0, 2, 3, 1)).reshape(n, h, w * cin)
    xp = jnp.pad(x2, ((0, 0), (1, 1), (cin, cin)))
    y1 = xp.reshape(n, (h + 2) // 2, 2 * (w + 2) * cin).astype(jnp.bfloat16)
    h1 = conv_relu_pool(y1, prep["B1"], prep["bias1"], hh=h // 2)   # (n,14,128)
    # h1 already carries layer-2's lane (spatial-W) padding; pad rows + pair them
    y2 = jnp.pad(h1, ((0, 0), (1, 1), (0, 0))).reshape(
        n, (h // 2 + 2) // 2, 2 * LANE)                             # (n,8,256)
    logits = conv_relu_pool_fc(y2, prep["B2"], prep["bias2"],
                               prep["wfc"], prep["bfc"], hh=h // 4)  # (n,1,10)
    return logits.reshape(n, -1)


# ---------------------------------------------------------------------------
# Pure-JAX reference (mirrors the kernel's bf16 input quantization)
# ---------------------------------------------------------------------------
def cnn_forward_ref(x_nchw, params):
    bf = jnp.bfloat16

    def conv(x, w, b):
        y = lax.conv_general_dilated(
            x.astype(bf), w.astype(bf), (1, 1), ((1, 1), (1, 1)),
            dimension_numbers=("NCHW", "OIHW", "NCHW"),
            preferred_element_type=jnp.float32)
        return jnp.maximum(y + b[None, :, None, None], 0.0)

    def pool(x):
        return lax.reduce_window(x, -jnp.inf, lax.max,
                                 (1, 1, 2, 2), (1, 1, 2, 2), "VALID")

    x = conv(x_nchw, params["w1"], params["b1"])
    x = pool(x).astype(bf)
    x = conv(x, params["w2"], params["b2"])
    x = pool(x)
    x = x.reshape(x.shape[0], -1)
    return x @ params["wfc"].T + params["bfc"]


if __name__ == "__main__":
    key = jax.random.PRNGKey(0)
    kx, kp = jax.random.split(key)
    # MNIST-like shapes implied by fc = Linear(16*7*7, 10): 28x28, 1 channel
    x = jax.random.normal(kx, (2, 1, 28, 28), jnp.float32)
    params = init_params(kp)
    prep = prepare_params(params)

    fwd = jax.jit(cnn_forward)
    logits = jax.block_until_ready(fwd(x, prep))
    assert logits.shape == (2, 10)

    ref = jax.block_until_ready(cnn_forward_ref(x, params))
    err = jnp.max(jnp.abs(logits - ref))
    assert jnp.allclose(logits, ref, rtol=1e-2, atol=1e-2), f"max abs err {err}"

    print("KERNEL_OK")
</pallas_src>

<mosaic_0001>
module attributes {stable_mosaic.version = 11 : i64} {
  func.func @_conv_relu_pool_kernel(%arg0: i32, %arg1: memref<1x15x60xbf16, #tpu.memory_space<vmem>>, %arg2: memref<2x60x512xbf16, #tpu.memory_space<vmem>>, %arg3: memref<1x512xf32, #tpu.memory_space<vmem>>, %arg4: memref<1x14x128xbf16, #tpu.memory_space<vmem>>) attributes {dimension_semantics = [#tpu.dimension_semantics<parallel>], iteration_bounds = array<i64: 2>, scalar_prefetch = 0 : i64, scratch_operands = 0 : i64, tpu.core_type = #tpu.core_type<tc>, window_params = [{transform_indices = @transform_0, window_bounds = array<i64: 1, 15, 60>}, {pipeline_mode = #tpu.pipeline_mode<synchronous>, transform_indices = @transform_1, window_bounds = array<i64: 2, 60, 512>}, {pipeline_mode = #tpu.pipeline_mode<synchronous>, transform_indices = @transform_2, window_bounds = array<i64: 1, 512>}, {transform_indices = @transform_3, window_bounds = array<i64: 1, 14, 128>}]} {
    %c0 = arith.constant 0 : index
    %c0_0 = arith.constant 0 : index
    %c0_1 = arith.constant 0 : index
    %0 = vector.load %arg1[%c0, %c0_0, %c0_1] : memref<1x15x60xbf16, #tpu.memory_space<vmem>>, vector<1x14x60xbf16>
    %1 = vector.shape_cast %0 : vector<1x14x60xbf16> to vector<14x60xbf16>
    %c0_2 = arith.constant 0 : index
    %c0_3 = arith.constant 0 : index
    %c0_4 = arith.constant 0 : index
    %2 = vector.load %arg2[%c0_2, %c0_3, %c0_4] : memref<2x60x512xbf16, #tpu.memory_space<vmem>>, vector<1x60x512xbf16>
    %3 = vector.shape_cast %2 : vector<1x60x512xbf16> to vector<60x512xbf16>
    %cst = arith.constant dense<0.000000e+00> : vector<14x512xf32>
    %4 = tpu.matmul %1, %3, %cst {dimension_numbers = #tpu.dot_dimension_numbers<[1], [0], [0], [1], [0, 0, 1, 1], [], []>} : vector<14x60xbf16>, vector<60x512xbf16>, vector<14x512xf32> -> vector<14x512xf32>
    %c0_5 = arith.constant 0 : index
    %c1 = arith.constant 1 : index
    %c0_6 = arith.constant 0 : index
    %5 = vector.load %arg1[%c0_5, %c1, %c0_6] : memref<1x15x60xbf16, #tpu.memory_space<vmem>>, vector<1x14x60xbf16>
    %6 = vector.shape_cast %5 : vector<1x14x60xbf16> to vector<14x60xbf16>
    %c1_7 = arith.constant 1 : index
    %c0_8 = arith.constant 0 : index
    %c0_9 = arith.constant 0 : index
    %7 = vector.load %arg2[%c1_7, %c0_8, %c0_9] : memref<2x60x512xbf16, #tpu.memory_space<vmem>>, vector<1x60x512xbf16>
    %8 = vector.shape_cast %7 : vector<1x60x512xbf16> to vector<60x512xbf16>
    %cst_10 = arith.constant dense<0.000000e+00> : vector<14x512xf32>
    %9 = tpu.matmul %6, %8, %cst_10 {dimension_numbers = #tpu.dot_dimension_numbers<[1], [0], [0], [1], [0, 0, 1, 1], [], []>} : vector<14x60xbf16>, vector<60x512xbf16>, vector<14x512xf32> -> vector<14x512xf32>
    %10 = arith.addf %4, %9 : vector<14x512xf32>
    %c0_11 = arith.constant 0 : index
    %c0_12 = arith.constant 0 : index
    %11 = vector.load %arg3[%c0_11, %c0_12] : memref<1x512xf32, #tpu.memory_space<vmem>>, vector<1x512xf32>
    %12 = vector.broadcast %11 : vector<1x512xf32> to vector<14x512xf32>
    %13 = arith.addf %10, %12 : vector<14x512xf32>
    %cst_13 = arith.constant 0.000000e+00 : f32
    %14 = vector.broadcast %cst_13 : f32 to vector<14x512xf32>
    %15 = arith.maximumf %13, %14 : vector<14x512xf32>
    %16 = vector.extract_strided_slice %15 {offsets = [0, 0], sizes = [14, 128], strides = [1, 1]} : vector<14x512xf32> to vector<14x128xf32>
    %17 = vector.extract_strided_slice %15 {offsets = [0, 128], sizes = [14, 128], strides = [1, 1]} : vector<14x512xf32> to vector<14x128xf32>
    %18 = arith.maximumf %16, %17 : vector<14x128xf32>
    %19 = vector.extract_strided_slice %15 {offsets = [0, 256], sizes = [14, 128], strides = [1, 1]} : vector<14x512xf32> to vector<14x128xf32>
    %20 = vector.extract_strided_slice %15 {offsets = [0, 384], sizes = [14, 128], strides = [1, 1]} : vector<14x512xf32> to vector<14x128xf32>
    %21 = arith.maximumf %19, %20 : vector<14x128xf32>
    %22 = arith.maximumf %18, %21 : vector<14x128xf32>
    %23 = vector.shape_cast %22 : vector<14x128xf32> to vector<1x14x128xf32>
    %24 = arith.truncf %23 : vector<1x14x128xf32> to vector<1x14x128xbf16>
    %c0_14 = arith.constant 0 : index
    %c0_15 = arith.constant 0 : index
    %c0_16 = arith.constant 0 : index
    %25 = vector.load %arg4[%c0_14, %c0_15, %c0_16] : memref<1x14x128xbf16, #tpu.memory_space<vmem>>, vector<1x14x128xbf16>
    tpu.vector_store %arg4[%c0_14, %c0_15, %c0_16], %24 {strides = array<i32>} : memref<1x14x128xbf16, #tpu.memory_space<vmem>>, vector<1x14x128xbf16>,
    return
  }
  func.func @transform_0(%arg0: i32) -> (i32, i32, i32) {
    %c0_i32 = arith.constant 0 : i32
    %c0_i32_0 = arith.constant 0 : i32
    %c0_i32_1 = arith.constant 0 : i32
    return %arg0, %c0_i32, %c0_i32_0 : i32, i32, i32
  }
  func.func @transform_1(%arg0: i32) -> (i32, i32, i32) {
    %c0_i32 = arith.constant 0 : i32
    %c0_i32_0 = arith.constant 0 : i32
    %c0_i32_1 = arith.constant 0 : i32
    %c0_i32_2 = arith.constant 0 : i32
    return %c0_i32, %c0_i32_0, %c0_i32_1 : i32, i32, i32
  }
  func.func @transform_2(%arg0: i32) -> (i32, i32) {
    %c0_i32 = arith.constant 0 : i32
    %c0_i32_0 = arith.constant 0 : i32
    %c0_i32_1 = arith.constant 0 : i32
    return %c0_i32, %c0_i32_0 : i32, i32
  }
  func.func @transform_3(%arg0: i32) -> (i32, i32, i32) {
    %c0_i32 = arith.constant 0 : i32
    %c0_i32_0 = arith.constant 0 : i32
    %c0_i32_1 = arith.constant 0 : i32
    return %arg0, %c0_i32, %c0_i32_0 : i32, i32, i32
  }
}

module attributes {stable_mosaic.version = 11 : i64} {
  func.func @_conv_relu_pool_fc_kernel(%arg0: i32, %arg1: memref<1x8x256xbf16, #tpu.memory_space<vmem>>, %arg2: memref<2x256x512xbf16, #tpu.memory_space<vmem>>, %arg3: memref<1x512xf32, #tpu.memory_space<vmem>>, %arg4: memref<7x128x10xf32, #tpu.memory_space<vmem>>, %arg5: memref<1x10xf32, #tpu.memory_space<vmem>>, %arg6: memref<1x1x10xf32, #tpu.memory_space<vmem>>) attributes {dimension_semantics = [#tpu.dimension_semantics<parallel>], iteration_bounds = array<i64: 2>, scalar_prefetch = 0 : i64, scratch_operands = 0 : i64, tpu.core_type = #tpu.core_type<tc>, window_params = [{transform_indices = @transform_0, window_bounds = array<i64: 1, 8, 256>}, {pipeline_mode = #tpu.pipeline_mode<synchronous>, transform_indices = @transform_1, window_bounds = array<i64: 2, 256, 512>}, {pipeline_mode = #tpu.pipeline_mode<synchronous>, transform_indices = @transform_2, window_bounds = array<i64: 1, 512>}, {pipeline_mode = #tpu.pipeline_mode<synchronous>, transform_indices = @transform_3, window_bounds = array<i64: 7, 128, 10>}, {pipeline_mode = #tpu.pipeline_mode<synchronous>, transform_indices = @transform_4, window_bounds = array<i64: 1, 10>}, {transform_indices = @transform_5, window_bounds = array<i64: 1, 1, 10>}]} {
    %c0 = arith.constant 0 : index
    %c0_0 = arith.constant 0 : index
    %c0_1 = arith.constant 0 : index
    %0 = vector.load %arg1[%c0, %c0_0, %c0_1] : memref<1x8x256xbf16, #tpu.memory_space<vmem>>, vector<1x7x256xbf16>
    %1 = vector.shape_cast %0 : vector<1x7x256xbf16> to vector<7x256xbf16>
    %c0_2 = arith.constant 0 : index
    %c0_3 = arith.constant 0 : index
    %c0_4 = arith.constant 0 : index
    %2 = vector.load %arg2[%c0_2, %c0_3, %c0_4] : memref<2x256x512xbf16, #tpu.memory_space<vmem>>, vector<1x256x512xbf16>
    %3 = vector.shape_cast %2 : vector<1x256x512xbf16> to vector<256x512xbf16>
    %cst = arith.constant dense<0.000000e+00> : vector<7x512xf32>
    %4 = tpu.matmul %1, %3, %cst {dimension_numbers = #tpu.dot_dimension_numbers<[1], [0], [0], [1], [0, 0, 1, 1], [], []>} : vector<7x256xbf16>, vector<256x512xbf16>, vector<7x512xf32> -> vector<7x512xf32>
    %c0_5 = arith.constant 0 : index
    %c1 = arith.constant 1 : index
    %c0_6 = arith.constant 0 : index
    %5 = vector.load %arg1[%c0_5, %c1, %c0_6] : memref<1x8x256xbf16, #tpu.memory_space<vmem>>, vector<1x7x256xbf16>
    %6 = vector.shape_cast %5 : vector<1x7x256xbf16> to vector<7x256xbf16>
    %c1_7 = arith.constant 1 : index
    %c0_8 = arith.constant 0 : index
    %c0_9 = arith.constant 0 : index
    %7 = vector.load %arg2[%c1_7, %c0_8, %c0_9] : memref<2x256x512xbf16, #tpu.memory_space<vmem>>, vector<1x256x512xbf16>
    %8 = vector.shape_cast %7 : vector<1x256x512xbf16> to vector<256x512xbf16>
    %cst_10 = arith.constant dense<0.000000e+00> : vector<7x512xf32>
    %9 = tpu.matmul %6, %8, %cst_10 {dimension_numbers = #tpu.dot_dimension_numbers<[1], [0], [0], [1], [0, 0, 1, 1], [], []>} : vector<7x256xbf16>, vector<256x512xbf16>, vector<7x512xf32> -> vector<7x512xf32>
    %10 = arith.addf %4, %9 : vector<7x512xf32>
    %c0_11 = arith.constant 0 : index
    %c0_12 = arith.constant 0 : index
    %11 = vector.load %arg3[%c0_11, %c0_12] : memref<1x512xf32, #tpu.memory_space<vmem>>, vector<1x512xf32>
    %12 = vector.broadcast %11 : vector<1x512xf32> to vector<7x512xf32>
    %13 = arith.addf %10, %12 : vector<7x512xf32>
    %cst_13 = arith.constant 0.000000e+00 : f32
    %14 = vector.broadcast %cst_13 : f32 to vector<7x512xf32>
    %15 = arith.maximumf %13, %14 : vector<7x512xf32>
    %16 = vector.extract_strided_slice %15 {offsets = [0, 0], sizes = [7, 128], strides = [1, 1]} : vector<7x512xf32> to vector<7x128xf32>
    %17 = vector.extract_strided_slice %15 {offsets = [0, 128], sizes = [7, 128], strides = [1, 1]} : vector<7x512xf32> to vector<7x128xf32>
    %18 = arith.maximumf %16, %17 : vector<7x128xf32>
    %19 = vector.extract_strided_slice %15 {offsets = [0, 256], sizes = [7, 128], strides = [1, 1]} : vector<7x512xf32> to vector<7x128xf32>
    %20 = vector.extract_strided_slice %15 {offsets = [0, 384], sizes = [7, 128], strides = [1, 1]} : vector<7x512xf32> to vector<7x128xf32>
    %21 = arith.maximumf %19, %20 : vector<7x128xf32>
    %22 = arith.maximumf %18, %21 : vector<7x128xf32>
    %c0_14 = arith.constant 0 : index
    %c0_15 = arith.constant 0 : index
    %23 = vector.load %arg5[%c0_14, %c0_15] : memref<1x10xf32, #tpu.memory_space<vmem>>, vector<1x10xf32>
    %24 = vector.extract_strided_slice %22 {offsets = [0, 0], sizes = [1, 128], strides = [1, 1]} : vector<7x128xf32> to vector<1x128xf32>
    %c0_16 = arith.constant 0 : index
    %c0_17 = arith.constant 0 : index
    %c0_18 = arith.constant 0 : index
    %25 = vector.load %arg4[%c0_16, %c0_17, %c0_18] : memref<7x128x10xf32, #tpu.memory_space<vmem>>, vector<1x128x10xf32>
    %26 = vector.shape_cast %25 : vector<1x128x10xf32> to vector<128x10xf32>
    %cst_19 = arith.constant dense<0.000000e+00> : vector<1x10xf32>
    %27 = tpu.matmul %24, %26, %cst_19 {dimension_numbers = #tpu.dot_dimension_numbers<[1], [0], [0], [1], [0, 0, 1, 1], [], []>} : vector<1x128xf32>, vector<128x10xf32>, vector<1x10xf32> -> vector<1x10xf32>
    %28 = arith.addf %23, %27 : vector<1x10xf32>
    %29 = vector.extract_strided_slice %22 {offsets = [1, 0], sizes = [1, 128], strides = [1, 1]} : vector<7x128xf32> to vector<1x128xf32>
    %c1_20 = arith.constant 1 : index
    %c0_21 = arith.constant 0 : index
    %c0_22 = arith.constant 0 : index
    %30 = vector.load %arg4[%c1_20, %c0_21, %c0_22] : memref<7x128x10xf32, #tpu.memory_space<vmem>>, vector<1x128x10xf32>
    %31 = vector.shape_cast %30 : vector<1x128x10xf32> to vector<128x10xf32>
    %cst_23 = arith.constant dense<0.000000e+00> : vector<1x10xf32>
    %32 = tpu.matmul %29, %31, %cst_23 {dimension_numbers = #tpu.dot_dimension_numbers<[1], [0], [0], [1], [0, 0, 1, 1], [], []>} : vector<1x128xf32>, vector<128x10xf32>, vector<1x10xf32> -> vector<1x10xf32>
    %33 = arith.addf %28, %32 : vector<1x10xf32>
    %34 = vector.extract_strided_slice %22 {offsets = [2, 0], sizes = [1, 128], strides = [1, 1]} : vector<7x128xf32> to vector<1x128xf32>
    %c2 = arith.constant 2 : index
    %c0_24 = arith.constant 0 : index
    %c0_25 = arith.constant 0 : index
    %35 = vector.load %arg4[%c2, %c0_24, %c0_25] : memref<7x128x10xf32, #tpu.memory_space<vmem>>, vector<1x128x10xf32>
    %36 = vector.shape_cast %35 : vector<1x128x10xf32> to vector<128x10xf32>
    %cst_26 = arith.constant dense<0.000000e+00> : vector<1x10xf32>
    %37 = tpu.matmul %34, %36, %cst_26 {dimension_numbers = #tpu.dot_dimension_numbers<[1], [0], [0], [1], [0, 0, 1, 1], [], []>} : vector<1x128xf32>, vector<128x10xf32>, vector<1x10xf32> -> vector<1x10xf32>
    %38 = arith.addf %33, %37 : vector<1x10xf32>
    %39 = vector.extract_strided_slice %22 {offsets = [3, 0], sizes = [1, 128], strides = [1, 1]} : vector<7x128xf32> to vector<1x128xf32>
    %c3 = arith.constant 3 : index
    %c0_27 = arith.constant 0 : index
    %c0_28 = arith.constant 0 : index
    %40 = vector.load %arg4[%c3, %c0_27, %c0_28] : memref<7x128x10xf32, #tpu.memory_space<vmem>>, vector<1x128x10xf32>
    %41 = vector.shape_cast %40 : vector<1x128x10xf32> to vector<128x10xf32>
    %cst_29 = arith.constant dense<0.000000e+00> : vector<1x10xf32>
    %42 = tpu.matmul %39, %41, %cst_29 {dimension_numbers = #tpu.dot_dimension_numbers<[1], [0], [0], [1], [0, 0, 1, 1], [], []>} : vector<1x128xf32>, vector<128x10xf32>, vector<1x10xf32> -> vector<1x10xf32>
    %43 = arith.addf %38, %42 : vector<1x10xf32>
    %44 = vector.extract_strided_slice %22 {offsets = [4, 0], sizes = [1, 128], strides = [1, 1]} : vector<7x128xf32> to vector<1x128xf32>
    %c4 = arith.constant 4 : index
    %c0_30 = arith.constant 0 : index
    %c0_31 = arith.constant 0 : index
    %45 = vector.load %arg4[%c4, %c0_30, %c0_31] : memref<7x128x10xf32, #tpu.memory_space<vmem>>, vector<1x128x10xf32>
    %46 = vector.shape_cast %45 : vector<1x128x10xf32> to vector<128x10xf32>
    %cst_32 = arith.constant dense<0.000000e+00> : vector<1x10xf32>
    %47 = tpu.matmul %44, %46, %cst_32 {dimension_numbers = #tpu.dot_dimension_numbers<[1], [0], [0], [1], [0, 0, 1, 1], [], []>} : vector<1x128xf32>, vector<128x10xf32>, vector<1x10xf32> -> vector<1x10xf32>
    %48 = arith.addf %43, %47 : vector<1x10xf32>
    %49 = vector.extract_strided_slice %22 {offsets = [5, 0], sizes = [1, 128], strides = [1, 1]} : vector<7x128xf32> to vector<1x128xf32>
    %c5 = arith.constant 5 : index
    %c0_33 = arith.constant 0 : index
    %c0_34 = arith.constant 0 : index
    %50 = vector.load %arg4[%c5, %c0_33, %c0_34] : memref<7x128x10xf32, #tpu.memory_space<vmem>>, vector<1x128x10xf32>
    %51 = vector.shape_cast %50 : vector<1x128x10xf32> to vector<128x10xf32>
    %cst_35 = arith.constant dense<0.000000e+00> : vector<1x10xf32>
    %52 = tpu.matmul %49, %51, %cst_35 {dimension_numbers = #tpu.dot_dimension_numbers<[1], [0], [0], [1], [0, 0, 1, 1], [], []>} : vector<1x128xf32>, vector<128x10xf32>, vector<1x10xf32> -> vector<1x10xf32>
    %53 = arith.addf %48, %52 : vector<1x10xf32>
    %54 = vector.extract_strided_slice %22 {offsets = [6, 0], sizes = [1, 128], strides = [1, 1]} : vector<7x128xf32> to vector<1x128xf32>
    %c6 = arith.constant 6 : index
    %c0_36 = arith.constant 0 : index
    %c0_37 = arith.constant 0 : index
    %55 = vector.load %arg4[%c6, %c0_36, %c0_37] : memref<7x128x10xf32, #tpu.memory_space<vmem>>, vector<1x128x10xf32>
    %56 = vector.shape_cast %55 : vector<1x128x10xf32> to vector<128x10xf32>
    %cst_38 = arith.constant dense<0.000000e+00> : vector<1x10xf32>
    %57 = tpu.matmul %54, %56, %cst_38 {dimension_numbers = #tpu.dot_dimension_numbers<[1], [0], [0], [1], [0, 0, 1, 1], [], []>} : vector<1x128xf32>, vector<128x10xf32>, vector<1x10xf32> -> vector<1x10xf32>
    %58 = arith.addf %53, %57 : vector<1x10xf32>
    %59 = vector.shape_cast %58 : vector<1x10xf32> to vector<1x1x10xf32>
    %c0_39 = arith.constant 0 : index
    %c0_40 = arith.constant 0 : index
    %c0_41 = arith.constant 0 : index
    %60 = vector.load %arg6[%c0_39, %c0_40, %c0_41] : memref<1x1x10xf32, #tpu.memory_space<vmem>>, vector<1x1x10xf32>
    tpu.vector_store %arg6[%c0_39, %c0_40, %c0_41], %59 {strides = array<i32>} : memref<1x1x10xf32, #tpu.memory_space<vmem>>, vector<1x1x10xf32>,
    return
  }
  func.func @transform_0(%arg0: i32) -> (i32, i32, i32) {
    %c0_i32 = arith.constant 0 : i32
    %c0_i32_0 = arith.constant 0 : i32
    %c0_i32_1 = arith.constant 0 : i32
    return %arg0, %c0_i32, %c0_i32_0 : i32, i32, i32
  }
  func.func @transform_1(%arg0: i32) -> (i32, i32, i32) {
    %c0_i32 = arith.constant 0 : i32
    %c0_i32_0 = arith.constant 0 : i32
    %c0_i32_1 = arith.constant 0 : i32
    %c0_i32_2 = arith.constant 0 : i32
    return %c0_i32, %c0_i32_0, %c0_i32_1 : i32, i32, i32
  }
  func.func @transform_2(%arg0: i32) -> (i32, i32) {
    %c0_i32 = arith.constant 0 : i32
    %c0_i32_0 = arith.constant 0 : i32
    %c0_i32_1 = arith.constant 0 : i32
    return %c0_i32, %c0_i32_0 : i32, i32
  }
  func.func @transform_3(%arg0: i32) -> (i32, i32, i32) {
    %c0_i32 = arith.constant 0 : i32
    %c0_i32_0 = arith.constant 0 : i32
    %c0_i32_1 = arith.constant 0 : i32
    %c0_i32_2 = arith.constant 0 : i32
    return %c0_i32, %c0_i32_0, %c0_i32_1 : i32, i32, i32
  }
  func.func @transform_4(%arg0: i32) -> (i32, i32) {
    %c0_i32 = arith.constant 0 : i32
    %c0_i32_0 = arith.constant 0 : i32
    %c0_i32_1 = arith.constant 0 : i32
    return %c0_i32, %c0_i32_0 : i32, i32
  }
  func.func @transform_5(%arg0: i32) -> (i32, i32, i32) {
    %c0_i32 = arith.constant 0 : i32
    %c0_i32_0 = arith.constant 0 : i32
    %c0_i32_1 = arith.constant 0 : i32
    return %arg0, %c0_i32, %c0_i32_0 : i32, i32, i32
  }
}

</mosaic_0001>

<bundles_post_ra>
// kernel: cnn_forward.2
= control target key start
LH: loop header
LB: loop body
LE: loop exit
PB: predicated region body
PF: predicated region fallthrough
CT: control target
= control target key end

     0   :  { %s859_s12 = smov 0   ;;  %s1003_s0 = inlined_call_operand.vmem [shape: bf16[2,15,60], index: 0, kind: input, shape index: {}]   ;;  %s1004_s1 = inlined_call_operand.vmem [shape: bf16[2,60,512], index: 1, kind: input, shape index: {}]   ;;  %s1005_s2 = inlined_call_operand.vmem [shape: f32[1,512], index: 2, kind: input, shape index: {}]   ;;  %s1006_s3 = inlined_call_operand.vmem [shape: bf16[2,14,128], index: 3, kind: output, shape index: {}]  }
   0x1 LB: > { %s688_s13 = sadd.s32 4294967295, %s836_s12   ;;  %p692_p0 = scmp.ge.s32.totalorder %s836_s12, 1  ;;  %s836_s12 = sphi %s859_s12, %s13_s12  }
   0x2   : > { %p137_p1 = scmp.lt.s32.totalorder %s836_s12, 3 }
   0x4   : > { %p138_p2 = pnand %p692_p0, %p137_p1 }
   0x5   : > { %v780_v0 = vld [vmem:[%s1004_s1 + $0x84] ss:$16 sps:$4 sm:$0xff] (!%p138_p2)   ;;  %v782_v1 = vld [vmem:[%s1004_s1 + $0x8c] ss:$16 sps:$4 sm:$0xff] (!%p138_p2)   ;;  %v838_v2 = vmov (!%p138_p2), 0   ;;  %p161_p3 = scmp.lt.s32.totalorder (!%p138_p2), %s688_s13, 1  ;;  %v581_v46 = vlaneseq (!%p138_p2) }
   0x6   : > { %141 = sbr.rel (%p138_p2) target bundleno = 267 (0x10b), region = 32  ;;  %345 = vmatprep.mubr.bf16.mxu0 (!%p138_p2), %v838_v2  ;;  %388 = vmatprep.mubr.bf16.mxu1 (!%p138_p2), %v838_v2  ;;  %v784_v3 = vld [vmem:[%s1004_s1 + $0x80] ss:$16 sps:$4 sm:$0xff] (!%p138_p2)   ;;  %v785_v4 = vld [vmem:[%s1004_s1 + $0x88] ss:$16 sps:$4 sm:$0xff] (!%p138_p2)   ;;  %vm300_vm0 = vcmask (!%p138_p2), 1045504  }
   0x7   : > { %313 = vmatprep.subr.bf16.mxu0 (!%p138_p2), %v780_v0  ;;  %356 = vmatprep.subr.bf16.mxu1 (!%p138_p2), %v782_v1  ;;  %v786_v5 = vld [vmem:[%s1004_s1 + $0xa4] ss:$16 sps:$4 sm:$0xff] (!%p138_p2)   ;;  %v788_v6 = vld [vmem:[%s1004_s1 + $0xac] ss:$16 sps:$4 sm:$0xff] (!%p138_p2)   ;;  %v790_v7 = vld [vmem:[%s1004_s1 + $0xa0] ss:$16 sps:$4 sm:$0xff] (!%p138_p2)  }
   0x8   : > { %314 = vmatpush1.bf16.msra.mxu0 (!%p138_p2), %v784_v3  ;;  %357 = vmatpush1.bf16.msra.mxu1 (!%p138_p2), %v785_v4  ;;  %v791_v8 = vld [vmem:[%s1004_s1 + $0xa8] ss:$16 sps:$4 sm:$0xff] (!%p138_p2)   ;;  %v792_v9 = vld [vmem:[%s1004_s1 + $0xc4] ss:$16 sps:$4 sm:$0xff] (!%p138_p2)   ;;  %v794_v10 = vld [vmem:[%s1004_s1 + $0xcc] ss:$16 sps:$4 sm:$0xff] (!%p138_p2)  }
   0x9   : > { %315 = vmatprep.subr.bf16.mxu0 (!%p138_p2), %v786_v5  ;;  %358 = vmatprep.subr.bf16.mxu1 (!%p138_p2), %v788_v6  ;;  %v796_v11 = vld [vmem:[%s1004_s1 + $0xc0] ss:$16 sps:$4 sm:$0xff] (!%p138_p2)   ;;  %v797_v12 = vld [vmem:[%s1004_s1 + $0xc8] ss:$16 sps:$4 sm:$0xff] (!%p138_p2)   ;;  %v806_v19 = vld [vmem:[%s1004_s1 + $0x4] ss:$16 sps:$4 sm:$0xff] (!%p138_p2)  }
   0xa   : > { %v798_v13 = vld [vmem:[%s1004_s1 + $0xe4] ss:$16 sps:$4 sm:$0x3f] (!%p138_p2)   ;;  %v800_v14 = vld [vmem:[%s1004_s1 + $0xec] ss:$16 sps:$4 sm:$0x3f] (!%p138_p2)  }
   0xb   : > { %v802_v15 = vld [vmem:[%s1004_s1 + $0xe0] ss:$16 sps:$4 sm:$0x3f] (!%p138_p2)   ;;  %v803_v16 = vld [vmem:[%s1004_s1 + $0xe8] ss:$16 sps:$4 sm:$0x3f] (!%p138_p2)  }
   0xc   : > { %316 = vmatpush1.bf16.msra.mxu0 (!%p138_p2), %v790_v7  ;;  %359 = vmatpush1.bf16.msra.mxu1 (!%p138_p2), %v791_v8  ;;  %v302_v17 = vsel (!%p138_p2), %vm300_vm0, %v802_v15, 0  ;;  %v308_v18 = vsel (!%p138_p2), %vm300_vm0, %v803_v16, 0  ;;  %v809_v20 = vld [vmem:[%s1004_s1 + $0xc] ss:$16 sps:$4 sm:$0xff] (!%p138_p2)   ;;  %v804_v26 = vld [vmem:[%s1004_s1] ss:$16 sps:$4 sm:$0xff] (!%p138_p2)  }
   0xd   : > { %s1008_s13 = smov (!%p161_p3, %s688_s13), 1  ;;  %317 = vmatprep.subr.bf16.mxu0 %v792_v9  ;;  %360 = vmatprep.subr.bf16.mxu1 %v794_v10  ;;  %v807_v28 = vld [vmem:[%s1004_s1 + $0x8] ss:$16 sps:$4 sm:$0xff]   ;;  %vm296_vm1 = vcmask 490496   ;;  %v813_v30 = vld [vmem:[%s1004_s1 + $0x24] ss:$16 sps:$4 sm:$0xff]  }
   0xe   : > { %s759_s5 = sshll.u32 %s1008_s13, 3  ;;  %v816_v31 = vld [vmem:[%s1004_s1 + $0x2c] ss:$16 sps:$4 sm:$0xff]   ;;  %v811_v32 = vld [vmem:[%s1004_s1 + $0x20] ss:$16 sps:$4 sm:$0xff]   ;;  %v582_v47 = vshrl.u32 %v581_v46, 7 }
   0xf   : > { %s925_s24 = scalar_lea.vmem %s1003_s0, %s759_s5  ;;  %v814_v33 = vld [vmem:[%s1004_s1 + $0x28] ss:$16 sps:$4 sm:$0xff]   ;;  %v819_v34 = vld [vmem:[%s1004_s1 + $0x44] ss:$16 sps:$4 sm:$0xff]   ;;  %v822_v35 = vld [vmem:[%s1004_s1 + $0x4c] ss:$16 sps:$4 sm:$0xff]   ;;  %s170_s11 = scalar_lea.vmem %s1006_s3, %s759_s5 }
  0x10   : > { %318 = vmatpush1.bf16.msra.mxu0 %v796_v11  ;;  %361 = vmatpush1.bf16.msra.mxu1 %v797_v12  ;;  %v172_v21 = vld [vmem:[%s925_s24] sm:$0xf]  ;;  %v190_v22 = vld [vmem:[%s925_s24 + $0x4] sm:$0xf]  ;;  %v820_v37 = vld [vmem:[%s1004_s1 + $0x48] ss:$16 sps:$4 sm:$0xff]  }
  0x11   : > { %730 = vmatprep.subr.msk.bf16.mxu0 %vm300_vm0, %v798_v13  ;;  %732 = vmatprep.subr.msk.bf16.mxu1 %vm300_vm0, %v800_v14  ;;  %v713_v23 = vcombine.low %v172_v21, %v190_v22  ;;  %v817_v36 = vld [vmem:[%s1004_s1 + $0x40] ss:$16 sps:$4 sm:$0xff]   ;;  %v823_v38 = vld [vmem:[%s1004_s1 + $0x64] ss:$16 sps:$4 sm:$0x3f]   ;;  %v583_v48 = vsub.s32 0, %v582_v47 }
  0x12   : > { %v825_v39 = vld [vmem:[%s1004_s1 + $0x6c] ss:$16 sps:$4 sm:$0x3f]   ;;  %v827_v40 = vld [vmem:[%s1004_s1 + $0x60] ss:$16 sps:$4 sm:$0x3f]  }
  0x13   : > { %v214_v24 = vshrl.u32 %v713_v23, 16  ;;  %v216_v25 = vshll.u32 %v713_v23, 16  ;;  %v828_v41 = vld [vmem:[%s1004_s1 + $0x68] ss:$16 sps:$4 sm:$0x3f]   ;;  %v482_v43 = vsel %vm300_vm0, %v827_v40, 0 }
  0x14   : > { %320 = vmatpush1.bf16.msra.mxu0 %v302_v17  ;;  %363 = vmatpush1.bf16.msra.mxu1 %v308_v18  ;;  %v173_v42 = vld [vmem:[%s925_s24 + $0x4] sm:$0x7]  ;;  %v488_v44 = vsel %vm300_vm0, %v828_v41, 0  ;;  %v591_v49 = vsub.s32 2, %v582_v47  ;;  %v579_v50 = vld [vmem:[%s1005_s2] sm:$0xf] }
  0x15   : > { %493 = vmatprep.subr.bf16.mxu0 %v806_v19  ;;  %536 = vmatprep.subr.bf16.mxu1 %v809_v20  ;;  %v218_v27 = vrot.slane %v216_v25, 1  ;;  %v734_v45 = vcombine.low %v172_v21, %v173_v42  ;;  %v587_v51 = vsub.s32 1, %v582_v47  ;;  %v595_v52 = vsub.s32 3, %v582_v47 }
  0x16   : > { %v584_v53 = vrot.slane %v579_v50, %v583_v48  ;;  %v592_v54 = vrot.slane %v579_v50, %v591_v49 }
  0x17   : > { %v219_v29 = vor.u32 %v218_v27, %v214_v24  ;;  %v588_v55 = vrot.slane %v579_v50, %v587_v51  ;;  %v596_v56 = vrot.slane %v579_v50, %v595_v52 }
  0x19   : > { %731 = vmatmul.mubr.msk.bf16.vlgmr.msra.gmra.mrb[0].mxu0 %vm296_vm1, %v219_v29  ;;  %733 = vmatmul.mubr.msk.bf16.vlgmr.msra.gmra.mrb[0].mxu1 %vm296_vm1, %v219_v29 }
  0x1a   : > { %494 = vmatpush1.bf16.msra.mxu0 %v804_v26  ;;  %537 = vmatpush1.bf16.msra.mxu1 %v807_v28 }
  0x1b   : > { %495 = vmatprep.subr.bf16.mxu0 %v813_v30  ;;  %538 = vmatprep.subr.bf16.mxu1 %v816_v31 }
  0x1c   : > { %525 = vmatprep.mubr.bf16.mxu0 %v838_v2  ;;  %568 = vmatprep.mubr.bf16.mxu1 %v838_v2 }
  0x1e   : > { %496 = vmatpush1.bf16.msra.mxu0 %v811_v32  ;;  %539 = vmatpush1.bf16.msra.mxu1 %v814_v33 }
  0x1f   : > { %497 = vmatprep.subr.bf16.mxu0 %v819_v34  ;;  %540 = vmatprep.subr.bf16.mxu1 %v822_v35 }
  0x22   : > { %498 = vmatpush1.bf16.msra.mxu0 %v817_v36  ;;  %541 = vmatpush1.bf16.msra.mxu1 %v820_v37 }
  0x23   : > { %751 = vmatprep.subr.msk.bf16.mxu0 %vm300_vm0, %v823_v38  ;;  %753 = vmatprep.subr.msk.bf16.mxu1 %vm300_vm0, %v825_v39 }
  0x26   : > { %500 = vmatpush1.bf16.msra.mxu0 %v482_v43  ;;  %543 = vmatpush1.bf16.msra.mxu1 %v488_v44 }
  0x29   : > { %752 = vmatmul.mubr.msk.bf16.vlgmr.msra.gmra.mrb[0].mxu0 %vm296_vm1, %v734_v45  ;;  %754 = vmatmul.mubr.msk.bf16.vlgmr.msra.gmra.mrb[0].mxu1 %vm296_vm1, %v734_v45 }
  0xfc   : > { %v527_v57 = vpop.f32.mrb[0].mxu0  ;;  %v570_v58 = vpop.f32.mrb[0].mxu1 }
  0xfd   : > { %v601_v59 = vadd.f32 %v584_v53, %v527_v57  ;;  %v603_v60 = vadd.f32 %v592_v54, %v570_v58  ;;  %v529_v61 = vpop.f32.mrb[1].mxu0  ;;  %v572_v62 = vpop.f32.mrb[1].mxu1 }
  0xfe   : > { %v602_v63 = vadd.f32 %v588_v55, %v529_v61  ;;  %v604_v0 = vadd.f32 %v596_v56, %v572_v62  ;;  %v531_v1 = vpop.f32.mrb[2].mxu0  ;;  %v574_v2 = vpop.f32.mrb[2].mxu1 }
  0xff   : > { %v609_v3 = vmax.f32 %v601_v59, 0.0  ;;  %v611_v4 = vmax.f32 %v603_v60, 0.0  ;;  %v605_v5 = vadd.f32 %v584_v53, %v531_v1  ;;  %v607_v6 = vadd.f32 %v592_v54, %v574_v2  ;;  %v533_v7 = vpop.f32.mrb[3].mxu0  ;;  %v576_v8 = vpop.f32.mrb[3].mxu1 }
 0x100   : > { %v610_v9 = vmax.f32 %v602_v63, 0.0  ;;  %v612_v10 = vmax.f32 %v604_v0, 0.0  ;;  %v606_v11 = vadd.f32 %v588_v55, %v533_v7  ;;  %v608_v12 = vadd.f32 %v596_v56, %v576_v8 }
 0x101   : > { %v613_v13 = vmax.f32 %v605_v5, 0.0  ;;  %v615_v14 = vmax.f32 %v607_v6, 0.0 }
 0x102   : > { %v617_v15 = vmax.f32 %v609_v3, %v610_v9  ;;  %v619_v16 = vmax.f32 %v611_v4, %v612_v10  ;;  %v614_v17 = vmax.f32 %v606_v11, 0.0  ;;  %v616_v18 = vmax.f32 %v608_v12, 0.0 }
 0x104   : > { %v621_v19 = vmax.f32 %v617_v15, %v619_v16  ;;  %v618_v20 = vmax.f32 %v613_v13, %v614_v17  ;;  %v620_v21 = vmax.f32 %v615_v14, %v616_v18 }
 0x106   : > { %v761_v22 = vpack.c.bf16 %v621_v19, %v621_v19  ;;  %v622_v23 = vmax.f32 %v618_v20, %v620_v21 }
 0x108   : > { %631 = vst [vmem:[%s170_s11] sm:$0xf] %v761_v22  ;;  %v762_v24 = vpack.c.bf16 %v622_v23, %v622_v23 }
 0x10a   : > { %632 = vst [vmem:[%s170_s11 + $0x4] sm:$0x7] %v762_v24 }
 0x10b PF: > { %s13_s12 = sadd.s32 1, %s836_s12  }
 0x10c   : > { %p10_p4 = scmp.ge.s32.totalorder %s13_s12, 4  }
 0x10e   :  { %12 = sbr.rel (!%p10_p4) target bundleno = 1 (0x1), region = 63 }

// kernel: cnn_forward.3
= control target key start
LH: loop header
LB: loop body
LE: loop exit
PB: predicated region body
PF: predicated region fallthrough
CT: control target
= control target key end

     0   :  { %10 = vsyncpa [#allocation3], 0  ;;  %s4016_s0 = inlined_call_operand.vmem [shape: bf16[2,8,256], index: 0, kind: input, shape index: {}]   ;;  %s4017_s1 = inlined_call_operand.vmem [shape: bf16[2,256,512], index: 1, kind: input, shape index: {}]   ;;  %s4018_s2 = inlined_call_operand.vmem [shape: f32[1,512], index: 2, kind: input, shape index: {}]   ;;  %s4019_s3 = inlined_call_operand.vmem [shape: f32[7,128,10], index: 3, kind: input, shape index: {}]   ;;  %s4020_s4 = inlined_call_operand.vmem [shape: f32[1,10], index: 4, kind: input, shape index: {}]   ;;  %s4021_s5 = inlined_call_operand.hbm [shape: f32[2,1,10], index: 5, kind: output, shape index: {}]  }
   0x1   :  { %12 = vsyncpa [#allocation3 + $0x1], 0  ;;  %s3089_s18 = smov 0   ;;  %s3091_s19 = smov 0  }
   0x2   :  { %s3093_s20 = smov 0   ;;  %s3095_s21 = smov 0  }
   0x3 LB: > { %s3110_s22 = sadd.s32 4294967295, %s3053_s21   ;;  %s1911_s23 = sadd.s32 4294967294, %s3053_s21   ;;  %s3053_s21 = sphi %s3095_s21, %s4027_s21   ;;  %s3049_s20 = sphi %s3093_s20, %s4026_s20   ;;  %s3045_s19 = sphi %s3091_s19, %s4025_s19   ;;  %s3041_s18 = sphi %s3089_s18, %s4024_s18  }
   0x4   : > { %s3114_s24 = sadd.s32 1, %s3053_s21   ;;  %s135_s25 = sadd.s32 1, %s3049_s20 }
   0x5   : > { %s132_s26 = ssub.s32 %s3053_s21, %s3114_s24  ;;  %p145_p0 = scmp.ne.s32.totalorder %s3049_s20, %s3045_s19 }
   0x6   : > { %p133_p1 = scmp.eq.s32.totalorder %s132_s26, 0  ;;  %p146_p2 = scmp.eq.s32.totalorder %s3110_s22, 1 }
   0x7   : > { %p151_p3 = scmp.ne.s32.totalorder %s3045_s19, %s3041_s18  ;;  %p152_p4 = scmp.eq.s32.totalorder %s1911_s23, 1 }
   0x8   : > { %s3125_s27 = scalar_select %p133_p1, %s3049_s20, %s135_s25  }
   0x9   : > { %p3127_p5 = por %p146_p2, %p145_p0  ;;  %p3131_p6 = por %p152_p4, %p151_p3 }
   0xa   : > { %p1914_p7 = scmp.ge.s32.totalorder %s3053_s21, 1  ;;  %p190_p8 = scmp.lt.s32.totalorder %s3053_s21, 3 }
   0xc   : > { %p191_p9 = pnand %p1914_p7, %p190_p8 }
   0xd   : > { %v2797_v0 = vld [vmem:[%s4017_s1 + $0x204] ss:$16 sps:$4 sm:$0xff] (!%p191_p9)   ;;  %v2801_v2 = vld [vmem:[%s4017_s1 + $0x200] ss:$16 sps:$4 sm:$0xff] (!%p191_p9)   ;;  %p217_p10 = scmp.lt.s32.totalorder (!%p191_p9), %s3110_s22, 1  ;;  %vm3056_vm0 = vmmov (!%p191_p9), 0  }
   0xe   : > { %194 = sbr.rel (%p191_p9) target bundleno = 819 (0x333), region = 40  ;;  %v2799_v1 = vld [vmem:[%s4017_s1 + $0x4] ss:$16 sps:$4 sm:$0xff] (!%p191_p9)   ;;  %693 = vmatprep.subr.bf16.mxu1 (!%p191_p9), %v2797_v0  ;;  %v2802_v3 = vld [vmem:[%s4017_s1] ss:$16 sps:$4 sm:$0xff] (!%p191_p9)   ;;  %s215_s12 = sand.u32 (!%p191_p9), 1, %s3045_s19  }
   0xf   : > { %1097 = vmatprep.subr.bf16.mxu0 (!%p191_p9), %v2799_v1  ;;  %v2803_v4 = vld [vmem:[%s4017_s1 + $0x224] ss:$16 sps:$4 sm:$0xff] (!%p191_p9)   ;;  %694 = vmatpush1.bf16.msra.mxu1 (!%p191_p9), %v2801_v2  ;;  %v2807_v6 = vld [vmem:[%s4017_s1 + $0x220] ss:$16 sps:$4 sm:$0xff] (!%p191_p9)   ;;  %s2207_s16 = sshll.u32 (!%p191_p9), %s3110_s22, 4  ;;  %s216_s17 = scalar_lea.vmem (!%p191_p9), [#allocation2], %s215_s12 }
  0x10   : > { %1098 = vmatpush1.bf16.msra.mxu0 (!%p191_p9), %v2802_v3  ;;  %v2805_v5 = vld [vmem:[%s4017_s1 + $0x24] ss:$16 sps:$4 sm:$0xff] (!%p191_p9)   ;;  %695 = vmatprep.subr.bf16.mxu1 (!%p191_p9), %v2803_v4  ;;  %v2808_v7 = vld [vmem:[%s4017_s1 + $0x20] ss:$16 sps:$4 sm:$0xff] (!%p191_p9)   ;;  %vm1841_vm1 = vcmask (!%p191_p9), 73728   ;;  %s3974_s26 = scalar_lea.hbm (!%p191_p9), %s4021_s5, %s2207_s16  ;;  %s1844_s30 = scalar_lea.sflag (!%p191_p9), [#allocation3], %s215_s12 }
  0x11   : > { %1099 = vmatprep.subr.bf16.mxu0 (!%p191_p9), %v2805_v5  ;;  %v2809_v8 = vld [vmem:[%s4017_s1 + $0x244] ss:$16 sps:$4 sm:$0xff] (!%p191_p9)   ;;  %v2813_v10 = vld [vmem:[%s4017_s1 + $0x240] ss:$16 sps:$4 sm:$0xff] (!%p191_p9)   ;;  %s3058_s6 = smov (!%p191_p9), [#allocation2]  }
  0x12   : > { %v2811_v9 = vld [vmem:[%s4017_s1 + $0x44] ss:$16 sps:$4 sm:$0xff] (!%p191_p9)   ;;  %v2814_v11 = vld [vmem:[%s4017_s1 + $0x40] ss:$16 sps:$4 sm:$0xff] (!%p191_p9)   ;;  %s2995_s7 = sshll.u32 (!%p191_p9), %s3058_s6, 4  ;;  %s2996_s7 = int_to_ptr.vmem [resolvable:$false] %s2995_s7 }
  0x13   : > { %696 = vmatpush1.bf16.msra.mxu1 (!%p191_p9), %v2807_v6  ;;  %v2815_v12 = vld [vmem:[%s4017_s1 + $0x264] ss:$16 sps:$4 sm:$0xff] (!%p191_p9)   ;;  %v2819_v14 = vld [vmem:[%s4017_s1 + $0x260] ss:$16 sps:$4 sm:$0xff] (!%p191_p9)  }
  0x14   : > { %1100 = vmatpush1.bf16.msra.mxu0 (!%p191_p9), %v2808_v7  ;;  %697 = vmatprep.subr.bf16.mxu1 (!%p191_p9), %v2809_v8  ;;  %v2817_v13 = vld [vmem:[%s4017_s1 + $0x64] ss:$16 sps:$4 sm:$0xff] (!%p191_p9)   ;;  %v2820_v15 = vld [vmem:[%s4017_s1 + $0x60] ss:$16 sps:$4 sm:$0xff] (!%p191_p9)  }
  0x15   : > { %1101 = vmatprep.subr.bf16.mxu0 %v2811_v9  ;;  %v2821_v16 = vld [vmem:[%s4017_s1 + $0x284] ss:$16 sps:$4 sm:$0xff]   ;;  %v2825_v18 = vld [vmem:[%s4017_s1 + $0x280] ss:$16 sps:$4 sm:$0xff]   ;;  %s218_s15 = scalar_select %p217_p10, %s3110_s22, 1 }
  0x16   : > { %v2823_v17 = vld [vmem:[%s4017_s1 + $0x84] ss:$16 sps:$4 sm:$0xff]   ;;  %v2826_v19 = vld [vmem:[%s4017_s1 + $0x80] ss:$16 sps:$4 sm:$0xff]  }
  0x17   : > { %698 = vmatpush1.bf16.msra.mxu1 %v2813_v10  ;;  %v2827_v20 = vld [vmem:[%s4017_s1 + $0x2a4] ss:$16 sps:$4 sm:$0xff]   ;;  %v2831_v22 = vld [vmem:[%s4017_s1 + $0x2a0] ss:$16 sps:$4 sm:$0xff]   ;;  %s2210_s8 = sshll.u32 %s218_s15, 3 }
  0x18   : > { %1102 = vmatpush1.bf16.msra.mxu0 %v2814_v11  ;;  %699 = vmatprep.subr.bf16.mxu1 %v2815_v12  ;;  %v2829_v21 = vld [vmem:[%s4017_s1 + $0xa4] ss:$16 sps:$4 sm:$0xff]   ;;  %v2832_v23 = vld [vmem:[%s4017_s1 + $0xa0] ss:$16 sps:$4 sm:$0xff]   ;;  %s221_s23 = scalar_lea.vmem %s4016_s0, %s2210_s8  ;;  %v2897_v10 = vld [vmem:[%s4017_s1 + $0x20c] ss:$16 sps:$4 sm:$0xff]  }
  0x19   : > { %1103 = vmatprep.subr.bf16.mxu0 %v2817_v13  ;;  %v2833_v24 = vld [vmem:[%s4017_s1 + $0x2c4] ss:$16 sps:$4 sm:$0xff]   ;;  %v2837_v26 = vld [vmem:[%s4017_s1 + $0x2c0] ss:$16 sps:$4 sm:$0xff]   ;;  %v2895_v12 = vld [vmem:[%s4017_s1 + $0x208] ss:$16 sps:$4 sm:$0xff]  }
  0x1a   : > { %v2835_v25 = vld [vmem:[%s4017_s1 + $0xc4] ss:$16 sps:$4 sm:$0xff]   ;;  %v2838_v27 = vld [vmem:[%s4017_s1 + $0xc0] ss:$16 sps:$4 sm:$0xff]   ;;  %v2900_v13 = vld [vmem:[%s4017_s1 + $0x22c] ss:$16 sps:$4 sm:$0xff]  }
  0x1b   : > { %700 = vmatpush1.bf16.msra.mxu1 %v2819_v14  ;;  %v2839_v28 = vld [vmem:[%s4017_s1 + $0x2e4] ss:$16 sps:$4 sm:$0xff]   ;;  %v2843_v30 = vld [vmem:[%s4017_s1 + $0x2e0] ss:$16 sps:$4 sm:$0xff]   ;;  %v2898_v14 = vld [vmem:[%s4017_s1 + $0x228] ss:$16 sps:$4 sm:$0xff]  }
  0x1c   : > { %1104 = vmatpush1.bf16.msra.mxu0 %v2820_v15  ;;  %701 = vmatprep.subr.bf16.mxu1 %v2821_v16  ;;  %v2841_v29 = vld [vmem:[%s4017_s1 + $0xe4] ss:$16 sps:$4 sm:$0xff]   ;;  %v2844_v31 = vld [vmem:[%s4017_s1 + $0xe0] ss:$16 sps:$4 sm:$0xff]   ;;  %v2903_v15 = vld [vmem:[%s4017_s1 + $0x24c] ss:$16 sps:$4 sm:$0xff]  }
  0x1d   : > { %1105 = vmatprep.subr.bf16.mxu0 %v2823_v17  ;;  %v2845_v32 = vld [vmem:[%s4017_s1 + $0x304] ss:$16 sps:$4 sm:$0xff]   ;;  %v2849_v34 = vld [vmem:[%s4017_s1 + $0x300] ss:$16 sps:$4 sm:$0xff]   ;;  %v2901_v16 = vld [vmem:[%s4017_s1 + $0x248] ss:$16 sps:$4 sm:$0xff]  }
  0x1e   : > { %v2847_v33 = vld [vmem:[%s4017_s1 + $0x104] ss:$16 sps:$4 sm:$0xff]   ;;  %v2850_v35 = vld [vmem:[%s4017_s1 + $0x100] ss:$16 sps:$4 sm:$0xff]   ;;  %v2906_v17 = vld [vmem:[%s4017_s1 + $0x26c] ss:$16 sps:$4 sm:$0xff]  }
  0x1f   : > { %702 = vmatpush1.bf16.msra.mxu1 %v2825_v18  ;;  %v2851_v36 = vld [vmem:[%s4017_s1 + $0x324] ss:$16 sps:$4 sm:$0xff]   ;;  %v2855_v38 = vld [vmem:[%s4017_s1 + $0x320] ss:$16 sps:$4 sm:$0xff]   ;;  %v2904_v18 = vld [vmem:[%s4017_s1 + $0x268] ss:$16 sps:$4 sm:$0xff]  }
  0x20   : > { %1106 = vmatpush1.bf16.msra.mxu0 %v2826_v19  ;;  %703 = vmatprep.subr.bf16.mxu1 %v2827_v20  ;;  %v2853_v37 = vld [vmem:[%s4017_s1 + $0x124] ss:$16 sps:$4 sm:$0xff]   ;;  %v2856_v39 = vld [vmem:[%s4017_s1 + $0x120] ss:$16 sps:$4 sm:$0xff]   ;;  %v2909_v19 = vld [vmem:[%s4017_s1 + $0x28c] ss:$16 sps:$4 sm:$0xff]  }
  0x21   : > { %1107 = vmatprep.subr.bf16.mxu0 %v2829_v21  ;;  %v2857_v40 = vld [vmem:[%s4017_s1 + $0x344] ss:$16 sps:$4 sm:$0xff]   ;;  %v2861_v42 = vld [vmem:[%s4017_s1 + $0x340] ss:$16 sps:$4 sm:$0xff]   ;;  %v2907_v20 = vld [vmem:[%s4017_s1 + $0x288] ss:$16 sps:$4 sm:$0xff]  }
  0x22   : > { %v2859_v41 = vld [vmem:[%s4017_s1 + $0x144] ss:$16 sps:$4 sm:$0xff]   ;;  %v2862_v43 = vld [vmem:[%s4017_s1 + $0x140] ss:$16 sps:$4 sm:$0xff]   ;;  %v2912_v21 = vld [vmem:[%s4017_s1 + $0x2ac] ss:$16 sps:$4 sm:$0xff]  }
  0x23   : > { %704 = vmatpush1.bf16.msra.mxu1 %v2831_v22  ;;  %v2863_v44 = vld [vmem:[%s4017_s1 + $0x364] ss:$16 sps:$4 sm:$0xff]   ;;  %v2867_v47 = vld [vmem:[%s4017_s1 + $0x360] ss:$16 sps:$4 sm:$0xff]   ;;  %v2910_v22 = vld [vmem:[%s4017_s1 + $0x2a8] ss:$16 sps:$4 sm:$0xff]  }
  0x24   : > { %1108 = vmatpush1.bf16.msra.mxu0 %v2832_v23  ;;  %705 = vmatprep.subr.bf16.mxu1 %v2833_v24  ;;  %v2865_v45 = vld [vmem:[%s4017_s1 + $0x164] ss:$16 sps:$4 sm:$0xff]   ;;  %v2868_v49 = vld [vmem:[%s4017_s1 + $0x160] ss:$16 sps:$4 sm:$0xff]   ;;  %v2915_v23 = vld [vmem:[%s4017_s1 + $0x2cc] ss:$16 sps:$4 sm:$0xff]  }
  0x25   : > { %1109 = vmatprep.subr.bf16.mxu0 %v2835_v25  ;;  %v222_v46 = vld [vmem:[%s221_s23] sm:$0xff]  ;;  %v2913_v24 = vld [vmem:[%s4017_s1 + $0x2c8] ss:$16 sps:$4 sm:$0xff]   ;;  %v2918_v25 = vld [vmem:[%s4017_s1 + $0x2ec] ss:$16 sps:$4 sm:$0xff]   ;;  %s1856_s23 = sshll.u32 %s216_s17, 4  ;;  %s3976_s23 = int_to_ptr.vmem [resolvable:$true] %s1856_s23 }
  0x26   : > { %v3283_v48 = vcombine.high %v222_v46, %v222_v46  ;;  %v2869_v50 = vld [vmem:[%s4017_s1 + $0x384] ss:$16 sps:$4 sm:$0xff]   ;;  %v2873_v54 = vld [vmem:[%s4017_s1 + $0x380] ss:$16 sps:$4 sm:$0xff]   ;;  %v3315_v62 = vcombine.low %v222_v46, %v222_v46  ;;  %v2946_v46 = vld [vmem:[%s4017_s1 + $0x28] ss:$16 sps:$4 sm:$0xff]   ;;  %p2998_p0 = scmp.lt.s32.totalorder %s3976_s23, %s2996_s7 }
  0x27   : > { %706 = vmatpush1.bf16.msra.mxu1 %v2837_v26  ;;  %v2871_v51 = vld [vmem:[%s4017_s1 + $0x184] ss:$16 sps:$4 sm:$0xff]   ;;  %v2874_v55 = vld [vmem:[%s4017_s1 + $0x180] ss:$16 sps:$4 sm:$0xff]   ;;  %v2916_v26 = vld [vmem:[%s4017_s1 + $0x2e8] ss:$16 sps:$4 sm:$0xff]  }
  0x28   : > { %1110 = vmatpush1.bf16.msra.mxu0 %v2838_v27  ;;  %707 = vmatprep.subr.bf16.mxu1 %v2839_v28  ;;  %v365_v52 = vshrl.u32 %v3283_v48, 16  ;;  %v367_v53 = vshll.u32 %v3283_v48, 16  ;;  %v2875_v57 = vld [vmem:[%s4017_s1 + $0x3a4] ss:$16 sps:$4 sm:$0xff]   ;;  %v2879_v60 = vld [vmem:[%s4017_s1 + $0x3a0] ss:$16 sps:$4 sm:$0xff]  }
  0x29   : > { %1111 = vmatprep.subr.bf16.mxu0 %v2841_v29  ;;  %1129 = vmatprep.mubr.bf16.mxu0 %v3283_v48  ;;  %v2877_v58 = vld [vmem:[%s4017_s1 + $0x1a4] ss:$16 sps:$4 sm:$0xff]   ;;  %v2880_v61 = vld [vmem:[%s4017_s1 + $0x1a0] ss:$16 sps:$4 sm:$0xff]   ;;  %v360_v3 = vshll.u32 %v3315_v62, 16  ;;  %v358_v7 = vshrl.u32 %v3315_v62, 16 }
  0x2a   : > { %v369_v56 = vrot.slane %v367_v53, 1  ;;  %v2881_v63 = vld [vmem:[%s4017_s1 + $0x3c4] ss:$16 sps:$4 sm:$0xff]   ;;  %v2885_v1 = vld [vmem:[%s4017_s1 + $0x3c0] ss:$16 sps:$4 sm:$0xff]   ;;  %s2991_s22 = scalar_lea.vmem %s3976_s23, 16 }
  0x2b   : > { %708 = vmatpush1.bf16.msra.mxu1 %v2843_v30  ;;  %v2883_v0 = vld [vmem:[%s4017_s1 + $0x1c4] ss:$16 sps:$4 sm:$0xff]   ;;  %v2886_v2 = vld [vmem:[%s4017_s1 + $0x1c0] ss:$16 sps:$4 sm:$0xff]   ;;  %v362_v8 = vrot.slane %v360_v3, 1  ;;  %p2992_p11 = scmp.ne.s32.totalorder %s3976_s23, %s2991_s22  ;;  %s2997_s8 = scalar_lea.vmem %s2996_s7, 32 }
  0x2c   : > { %1112 = vmatpush1.bf16.msra.mxu0 %v2844_v31  ;;  %709 = vmatprep.subr.bf16.mxu1 %v2845_v32  ;;  %v370_v59 = vor.u32 %v369_v56, %v365_v52  ;;  %v2887_v4 = vld [vmem:[%s4017_s1 + $0x3e4] ss:$16 sps:$4 sm:$0xff]   ;;  %v2891_v6 = vld [vmem:[%s4017_s1 + $0x3e0] ss:$16 sps:$4 sm:$0xff]   ;;  %v2921_v27 = vld [vmem:[%s4017_s1 + $0x30c] ss:$16 sps:$4 sm:$0xff]   ;;  %p2999_p1 = scmp.lt.s32.totalorder %s2997_s8, %s2991_s22 }
  0x2d   : > { %1113 = vmatprep.subr.bf16.mxu0 %v2847_v33  ;;  %v2889_v5 = vld [vmem:[%s4017_s1 + $0x1e4] ss:$16 sps:$4 sm:$0xff]   ;;  %v2892_v9 = vld [vmem:[%s4017_s1 + $0x1e0] ss:$16 sps:$4 sm:$0xff]   ;;  %v3346_v11 = vor.u32 %v362_v8, %v358_v7  ;;  %v2919_v28 = vld [vmem:[%s4017_s1 + $0x308] ss:$16 sps:$4 sm:$0xff]   ;;  %p2993_p12 = pnand %p2992_p11, %p3127_p5 }
  0x2e   : > { %725 = vmatprep.mubr.bf16.mxu1 %v370_v59  ;;  %v2924_v29 = vld [vmem:[%s4017_s1 + $0x32c] ss:$16 sps:$4 sm:$0xff]   ;;  %v2922_v30 = vld [vmem:[%s4017_s1 + $0x328] ss:$16 sps:$4 sm:$0xff]   ;;  %p3000_p2 = por %p2999_p1, %p2998_p0 }
  0x2f   : > { %710 = vmatpush1.bf16.msra.mxu1 %v2849_v34  ;;  %v2927_v31 = vld [vmem:[%s4017_s1 + $0x34c] ss:$16 sps:$4 sm:$0xff]   ;;  %v2925_v32 = vld [vmem:[%s4017_s1 + $0x348] ss:$16 sps:$4 sm:$0xff]   ;;  %p2994_p13 = pneg %p2993_p12 }
  0x30   : > { %1114 = vmatpush1.bf16.msra.mxu0 %v2850_v35  ;;  %711 = vmatprep.subr.bf16.mxu1 %v2851_v36  ;;  %v2930_v33 = vld [vmem:[%s4017_s1 + $0x36c] ss:$16 sps:$4 sm:$0xff]   ;;  %v2928_v34 = vld [vmem:[%s4017_s1 + $0x368] ss:$16 sps:$4 sm:$0xff]  }
  0x31   : > { %1115 = vmatprep.subr.bf16.mxu0 %v2853_v37  ;;  %v2933_v35 = vld [vmem:[%s4017_s1 + $0x38c] ss:$16 sps:$4 sm:$0xff]   ;;  %v2931_v36 = vld [vmem:[%s4017_s1 + $0x388] ss:$16 sps:$4 sm:$0xff]   ;;  %p3001_p3 = pnand %p3000_p2, %p2994_p13 }
  0x32   : > { %v2936_v37 = vld [vmem:[%s4017_s1 + $0x3ac] ss:$16 sps:$4 sm:$0xff]   ;;  %v2955_v52 = vld [vmem:[%s4017_s1 + $0x88] ss:$16 sps:$4 sm:$0xff]  }
  0x33   : > { %712 = vmatpush1.bf16.msra.mxu1 %v2855_v38  ;;  %v2934_v38 = vld [vmem:[%s4017_s1 + $0x3a8] ss:$16 sps:$4 sm:$0xff]   ;;  %v2960_v53 = vld [vmem:[%s4017_s1 + $0xac] ss:$16 sps:$4 sm:$0xff]  }
  0x34   : > { %1116 = vmatpush1.bf16.msra.mxu0 %v2856_v39  ;;  %713 = vmatprep.subr.bf16.mxu1 %v2857_v40  ;;  %v2939_v39 = vld [vmem:[%s4017_s1 + $0x3cc] ss:$16 sps:$4 sm:$0xff]   ;;  %v2937_v40 = vld [vmem:[%s4017_s1 + $0x3c8] ss:$16 sps:$4 sm:$0xff]  }
  0x35   : > { %1117 = vmatprep.subr.bf16.mxu0 %v2859_v41  ;;  %v2942_v41 = vld [vmem:[%s4017_s1 + $0x3ec] ss:$16 sps:$4 sm:$0xff]   ;;  %v2961_v56 = vld [vmem:[%s4017_s1 + $0xc8] ss:$16 sps:$4 sm:$0xff]  }
  0x36   : > { %v2976_v3 = vld [vmem:[%s4017_s1 + $0x168] ss:$16 sps:$4 sm:$0xff]   ;;  %v2987_v8 = vld [vmem:[%s4017_s1 + $0x1cc] ss:$16 sps:$4 sm:$0xff]  }
  0x37   : > { %714 = vmatpush1.bf16.msra.mxu1 %v2861_v42  ;;  %v2940_v42 = vld [vmem:[%s4017_s1 + $0x3e8] ss:$16 sps:$4 sm:$0xff]  }
  0x38   : > { %1118 = vmatpush1.bf16.msra.mxu0 %v2862_v43  ;;  %715 = vmatprep.subr.bf16.mxu1 %v2863_v44  ;;  %v2945_v43 = vld [vmem:[%s4017_s1 + $0xc] ss:$16 sps:$4 sm:$0xff]   ;;  %v2943_v44 = vld [vmem:[%s4017_s1 + $0x8] ss:$16 sps:$4 sm:$0xff]  }
  0x39   : > { %1119 = vmatprep.subr.bf16.mxu0 %v2865_v45  ;;  %v2948_v45 = vld [vmem:[%s4017_s1 + $0x2c] ss:$16 sps:$4 sm:$0xff]   ;;  %v2982_v7 = vld [vmem:[%s4017_s1 + $0x1a8] ss:$16 sps:$4 sm:$0xff]  }
  0x3b   : > { %716 = vmatpush1.bf16.msra.mxu1 %v2867_v47  ;;  %v2951_v47 = vld [vmem:[%s4017_s1 + $0x4c] ss:$16 sps:$4 sm:$0xff]  }
  0x3c   : > { %1120 = vmatpush1.bf16.msra.mxu0 %v2868_v49  ;;  %717 = vmatprep.subr.bf16.mxu1 %v2869_v50  ;;  %v2949_v49 = vld [vmem:[%s4017_s1 + $0x48] ss:$16 sps:$4 sm:$0xff]   ;;  %v2954_v50 = vld [vmem:[%s4017_s1 + $0x6c] ss:$16 sps:$4 sm:$0xff]  }
  0x3d   : > { %1121 = vmatprep.subr.bf16.mxu0 %v2871_v51  ;;  %v2957_v51 = vld [vmem:[%s4017_s1 + $0x8c] ss:$16 sps:$4 sm:$0xff]  }
  0x3f   : > { %718 = vmatpush1.bf16.msra.mxu1 %v2873_v54  ;;  %v2958_v54 = vld [vmem:[%s4017_s1 + $0xa8] ss:$16 sps:$4 sm:$0xff]  }
  0x40   : > { %1122 = vmatpush1.bf16.msra.mxu0 %v2874_v55  ;;  %719 = vmatprep.subr.bf16.mxu1 %v2875_v57  ;;  %v2963_v55 = vld [vmem:[%s4017_s1 + $0xcc] ss:$16 sps:$4 sm:$0xff]  }
  0x41   : > { %1123 = vmatprep.subr.bf16.mxu0 %v2877_v58  ;;  %v2966_v57 = vld [vmem:[%s4017_s1 + $0xec] ss:$16 sps:$4 sm:$0xff]   ;;  %v2964_v58 = vld [vmem:[%s4017_s1 + $0xe8] ss:$16 sps:$4 sm:$0xff]  }
  0x43   : > { %720 = vmatpush1.bf16.msra.mxu1 %v2879_v60  ;;  %v2967_v60 = vld [vmem:[%s4017_s1 + $0x108] ss:$16 sps:$4 sm:$0xff]  }
  0x44   : > { %1124 = vmatpush1.bf16.msra.mxu0 %v2880_v61  ;;  %721 = vmatprep.subr.bf16.mxu1 %v2881_v63  ;;  %v2972_v61 = vld [vmem:[%s4017_s1 + $0x12c] ss:$16 sps:$4 sm:$0xff]   ;;  %v2970_v63 = vld [vmem:[%s4017_s1 + $0x128] ss:$16 sps:$4 sm:$0xff]  }
  0x45   : > { %1125 = vmatprep.subr.bf16.mxu0 %v2883_v0  ;;  %v2975_v0 = vld [vmem:[%s4017_s1 + $0x14c] ss:$16 sps:$4 sm:$0xff]  }
  0x47   : > { %722 = vmatpush1.bf16.msra.mxu1 %v2885_v1  ;;  %v2973_v1 = vld [vmem:[%s4017_s1 + $0x148] ss:$16 sps:$4 sm:$0xff]  }
  0x48   : > { %1126 = vmatpush1.bf16.msra.mxu0 %v2886_v2  ;;  %723 = vmatprep.subr.bf16.mxu1 %v2887_v4  ;;  %v2978_v2 = vld [vmem:[%s4017_s1 + $0x16c] ss:$16 sps:$4 sm:$0xff]  }
  0x49   : > { %1127 = vmatprep.subr.bf16.mxu0 %v2889_v5  ;;  %v2981_v4 = vld [vmem:[%s4017_s1 + $0x18c] ss:$16 sps:$4 sm:$0xff]   ;;  %v2979_v5 = vld [vmem:[%s4017_s1 + $0x188] ss:$16 sps:$4 sm:$0xff]  }
  0x4b   : > { %724 = vmatpush1.bf16.msra.mxu1 %v2891_v6  ;;  %v2984_v6 = vld [vmem:[%s4017_s1 + $0x1ac] ss:$16 sps:$4 sm:$0xff]  }
  0x4c   : > { %1128 = vmatpush1.bf16.msra.mxu0 %v2892_v9  ;;  %734 = vmatprep.subr.bf16.mxu1 %v2897_v10  ;;  %v2985_v9 = vld [vmem:[%s4017_s1 + $0x1c8] ss:$16 sps:$4 sm:$0xff]   ;;  %v2990_v10 = vld [vmem:[%s4017_s1 + $0x1ec] ss:$16 sps:$4 sm:$0xff]  }
  0x4e   : > { %726 = vmatmul.mubr.bf16.vlgmr.msra.gmra.mrb[0].mxu1 %v3346_v11 }
  0x4f   : > { %1130 = vmatmul.mubr.bf16.vlgmr.msra.gmra.mrb[0].mxu0 %v3315_v62  ;;  %735 = vmatpush1.bf16.msra.mxu1 %v2895_v12  ;;  %v1213_v12 = vld [vmem:[%s4019_s3] sm:$0xff] }
  0x50   : > { %766 = vmatprep.mubr.bf16.mxu1 %v370_v59  ;;  %736 = vmatprep.subr.bf16.mxu1 %v2900_v13  ;;  %v2969_v59 = vld [vmem:[%s4017_s1 + $0x10c] ss:$16 sps:$4 sm:$0xff]  }
  0x51   : > { %v1214_v13 = vld [vmem:[%s4019_s3 + $0x8] sm:$0xff] }
  0x53   : > { %737 = vmatpush1.bf16.msra.mxu1 %v2898_v14  ;;  %v2111_v14 = vld [vmem:[%s4019_s3 + $0x80] sm:$0xff] }
  0x54   : > { %738 = vmatprep.subr.bf16.mxu1 %v2903_v15  ;;  %v3055_v15 = vmov 0.0|0.0  }
  0x55   : > { %2599 = vmatprep.subr.bf16.mxu0 %v3055_v15 }
  0x57   : > { %739 = vmatpush1.bf16.msra.mxu1 %v2901_v16  ;;  %v2576_v16 = vpack.c.bf16 %v1214_v13, %v1213_v12  ;;  %v1227_v12 = vld [vmem:[%s4019_s3 + $0x70] sm:$0xff]  ;;  %v1228_v13 = vld [vmem:[%s4019_s3 + $0x78] sm:$0xff] }
  0x58   : > { %740 = vmatprep.subr.bf16.mxu1 %v2906_v17  ;;  %v1215_v17 = vld [vmem:[%s4019_s3 + $0x10] sm:$0xff] }
  0x5b   : > { %741 = vmatpush1.bf16.msra.mxu1 %v2904_v18  ;;  %v1216_v18 = vld [vmem:[%s4019_s3 + $0x18] sm:$0xff] }
  0x5c   : > { %742 = vmatprep.subr.bf16.mxu1 %v2909_v19 }
  0x5f   : > { %743 = vmatpush1.bf16.msra.mxu1 %v2907_v20  ;;  %v2113_v20 = vld [vmem:[%s4019_s3 + $0x90] sm:$0xff] }
  0x60   : > { %744 = vmatprep.subr.bf16.mxu1 %v2912_v21  ;;  %v2114_v21 = vld [vmem:[%s4019_s3 + $0x98] sm:$0xff] }
  0x63   : > { %745 = vmatpush1.bf16.msra.mxu1 %v2910_v22  ;;  %v2579_v22 = vpack.c.bf16 %v1216_v18, %v1215_v17 }
  0x64   : > { %746 = vmatprep.subr.bf16.mxu1 %v2915_v23  ;;  %v2603_v23 = vpack.c.bf16 %v2114_v21, %v2113_v20 }
  0x67   : > { %747 = vmatpush1.bf16.msra.mxu1 %v2913_v24  ;;  %v1217_v24 = vld [vmem:[%s4019_s3 + $0x20] sm:$0xff] }
  0x68   : > { %748 = vmatprep.subr.bf16.mxu1 %v2918_v25  ;;  %v1218_v25 = vld [vmem:[%s4019_s3 + $0x28] sm:$0xff] }
  0x6b   : > { %749 = vmatpush1.bf16.msra.mxu1 %v2916_v26  ;;  %v2115_v26 = vld [vmem:[%s4019_s3 + $0xa0] sm:$0xff] }
  0x6c   : > { %750 = vmatprep.subr.bf16.mxu1 %v2921_v27  ;;  %v2116_v27 = vld [vmem:[%s4019_s3 + $0xa8] sm:$0xff] }
  0x6f   : > { %751 = vmatpush1.bf16.msra.mxu1 %v2919_v28  ;;  %v2582_v28 = vpack.c.bf16 %v1218_v25, %v1217_v24 }
  0x70   : > { %752 = vmatprep.subr.bf16.mxu1 %v2924_v29  ;;  %v2606_v29 = vpack.c.bf16 %v2116_v27, %v2115_v26 }
  0x73   : > { %753 = vmatpush1.bf16.msra.mxu1 %v2922_v30  ;;  %v1219_v30 = vld [vmem:[%s4019_s3 + $0x30] sm:$0xff] }
  0x74   : > { %754 = vmatprep.subr.bf16.mxu1 %v2927_v31  ;;  %v1220_v31 = vld [vmem:[%s4019_s3 + $0x38] sm:$0xff] }
  0x77   : > { %755 = vmatpush1.bf16.msra.mxu1 %v2925_v32  ;;  %v2117_v32 = vld [vmem:[%s4019_s3 + $0xb0] sm:$0xff] }
  0x78   : > { %756 = vmatprep.subr.bf16.mxu1 %v2930_v33  ;;  %v2118_v33 = vld [vmem:[%s4019_s3 + $0xb8] sm:$0xff] }
  0x7b   : > { %757 = vmatpush1.bf16.msra.mxu1 %v2928_v34  ;;  %v2585_v34 = vpack.c.bf16 %v1220_v31, %v1219_v30 }
  0x7c   : > { %758 = vmatprep.subr.bf16.mxu1 %v2933_v35  ;;  %v2609_v35 = vpack.c.bf16 %v2118_v33, %v2117_v32 }
  0x7f   : > { %759 = vmatpush1.bf16.msra.mxu1 %v2931_v36  ;;  %v1221_v36 = vld [vmem:[%s4019_s3 + $0x40] sm:$0xff] }
  0x80   : > { %760 = vmatprep.subr.bf16.mxu1 %v2936_v37  ;;  %v1222_v37 = vld [vmem:[%s4019_s3 + $0x48] sm:$0xff] }
  0x83   : > { %761 = vmatpush1.bf16.msra.mxu1 %v2934_v38  ;;  %v2119_v38 = vld [vmem:[%s4019_s3 + $0xc0] sm:$0xff] }
  0x84   : > { %762 = vmatprep.subr.bf16.mxu1 %v2939_v39  ;;  %v2120_v39 = vld [vmem:[%s4019_s3 + $0xc8] sm:$0xff] }
  0x87   : > { %763 = vmatpush1.bf16.msra.mxu1 %v2937_v40  ;;  %v2588_v40 = vpack.c.bf16 %v1222_v37, %v1221_v36 }
  0x88   : > { %764 = vmatprep.subr.bf16.mxu1 %v2942_v41  ;;  %v2612_v41 = vpack.c.bf16 %v2120_v39, %v2119_v38  ;;  %v2127_v39 = vld [vmem:[%s4019_s3 + $0x100] sm:$0xff] }
  0x8b   : > { %765 = vmatpush1.bf16.msra.mxu1 %v2940_v42  ;;  %v1181_v42 = vlaneseq }
  0x8c   : > { %1138 = vmatprep.subr.bf16.mxu1 %v2945_v43 }
  0x8d   : > { %v3614_v43 = vshrl.u32 %v1181_v42, 7 }
  0x8e   : > { %767 = vmatmul.mubr.bf16.vlgmr.msra.gmra.mrb[4].mxu1 %v3346_v11  ;;  %v2988_v11 = vld [vmem:[%s4017_s1 + $0x1e8] ss:$16 sps:$4 sm:$0xff]  }
  0x8f   : > { %1139 = vmatpush1.bf16.msra.mxu1 %v2943_v44  ;;  %1170 = vmatprep.mubr.bf16.mxu1 %v3283_v48  ;;  %v2952_v48 = vld [vmem:[%s4017_s1 + $0x68] ss:$16 sps:$4 sm:$0xff]   ;;  %v1183_v44 = vsub.s32 0, %v3614_v43  ;;  %v1191_v24 = vsub.s32 2, %v3614_v43  ;;  %v1195_v25 = vsub.s32 3, %v3614_v43 }
  0x90   : > { %1140 = vmatprep.subr.bf16.mxu1 %v2948_v45  ;;  %v1179_v45 = vld [vmem:[%s4018_s2] sm:$0xf] }
  0x91   : > { %v1192_v26 = vrot.slane %v1179_v45, %v1191_v24 }
  0x93   : > { %1141 = vmatpush1.bf16.msra.mxu1 %v2946_v46  ;;  %v1187_v46 = vsub.s32 1, %v3614_v43 }
  0x94   : > { %1142 = vmatprep.subr.bf16.mxu1 %v2951_v47  ;;  %v1223_v47 = vld [vmem:[%s4019_s3 + $0x50] sm:$0xff] }
  0x97   : > { %1143 = vmatpush1.bf16.msra.mxu1 %v2949_v49  ;;  %v1224_v49 = vld [vmem:[%s4019_s3 + $0x58] sm:$0xff] }
  0x98   : > { %1144 = vmatprep.subr.bf16.mxu1 %v2954_v50  ;;  %v1184_v50 = vrot.slane %v1179_v45, %v1183_v44  ;;  %v2129_v44 = vld [vmem:[%s4019_s3 + $0x110] sm:$0xff] }
  0x9b   : > { %1145 = vmatpush1.bf16.msra.mxu1 %v2952_v48  ;;  %v2591_v48 = vpack.c.bf16 %v1224_v49, %v1223_v47  ;;  %v2131_v47 = vld [vmem:[%s4019_s3 + $0x120] sm:$0xff]  ;;  %v2132_v49 = vld [vmem:[%s4019_s3 + $0x128] sm:$0xff] }
  0x9c   : > { %1146 = vmatprep.subr.bf16.mxu1 %v2957_v51  ;;  %v2121_v51 = vld [vmem:[%s4019_s3 + $0xd0] sm:$0xff] }
  0x9f   : > { %1147 = vmatpush1.bf16.msra.mxu1 %v2955_v52  ;;  %v2122_v52 = vld [vmem:[%s4019_s3 + $0xd8] sm:$0xff] }
  0xa0   : > { %1148 = vmatprep.subr.bf16.mxu1 %v2960_v53 }
  0xa3   : > { %1149 = vmatpush1.bf16.msra.mxu1 %v2958_v54 }
  0xa4   : > { %1150 = vmatprep.subr.bf16.mxu1 %v2963_v55  ;;  %v1188_v55 = vrot.slane %v1179_v45, %v1187_v46 }
  0xa7   : > { %1151 = vmatpush1.bf16.msra.mxu1 %v2961_v56  ;;  %v2615_v56 = vpack.c.bf16 %v2122_v52, %v2121_v51  ;;  %v2134_v51 = vld [vmem:[%s4019_s3 + $0x138] sm:$0xff] }
  0xa8   : > { %1152 = vmatprep.subr.bf16.mxu1 %v2966_v57 }
  0xab   : > { %1153 = vmatpush1.bf16.msra.mxu1 %v2964_v58 }
  0xac   : > { %1154 = vmatprep.subr.bf16.mxu1 %v2969_v59 }
  0xaf   : > { %1155 = vmatpush1.bf16.msra.mxu1 %v2967_v60 }
  0xb0   : > { %1156 = vmatprep.subr.bf16.mxu1 %v2972_v61 }
  0xb3   : > { %1157 = vmatpush1.bf16.msra.mxu1 %v2970_v63 }
  0xb4   : > { %1158 = vmatprep.subr.bf16.mxu1 %v2975_v0  ;;  %v1225_v0 = vld [vmem:[%s4019_s3 + $0x60] sm:$0xff] }
  0xb7   : > { %1159 = vmatpush1.bf16.msra.mxu1 %v2973_v1  ;;  %v1226_v1 = vld [vmem:[%s4019_s3 + $0x68] sm:$0xff] }
  0xb8   : > { %1160 = vmatprep.subr.bf16.mxu1 %v2978_v2 }
  0xbb   : > { %1161 = vmatpush1.bf16.msra.mxu1 %v2976_v3 }
  0xbc   : > { %1162 = vmatprep.subr.bf16.mxu1 %v2981_v4 }
  0xbf   : > { %1163 = vmatpush1.bf16.msra.mxu1 %v2979_v5  ;;  %v2594_v5 = vpack.c.bf16 %v1226_v1, %v1225_v0  ;;  %v2142_v0 = vld [vmem:[%s4019_s3 + $0x178] sm:$0xff] }
  0xc0   : > { %1164 = vmatprep.subr.bf16.mxu1 %v2984_v6  ;;  %v2123_v6 = vld [vmem:[%s4019_s3 + $0xe0] sm:$0xff] }
  0xc3   : > { %1165 = vmatpush1.bf16.msra.mxu1 %v2982_v7  ;;  %v2124_v7 = vld [vmem:[%s4019_s3 + $0xe8] sm:$0xff] }
  0xc4   : > { %1166 = vmatprep.subr.bf16.mxu1 %v2987_v8 }
  0xc7   : > { %1167 = vmatpush1.bf16.msra.mxu1 %v2985_v9  ;;  %v2618_v9 = vpack.c.bf16 %v2124_v7, %v2123_v6  ;;  %v2145_v6 = vld [vmem:[%s4019_s3 + $0x190] sm:$0xff]  ;;  %v2146_v7 = vld [vmem:[%s4019_s3 + $0x198] sm:$0xff] }
  0xc8   : > { %1168 = vmatprep.subr.bf16.mxu1 %v2990_v10 }
  0xcb   : > { %1169 = vmatpush1.bf16.msra.mxu1 %v2988_v11 }
  0xcc   : > { %2575 = vmatprep.subr.bf16.mxu1 %v3055_v15 }
  0xce   : > { %1171 = vmatmul.mubr.bf16.vlgmr.msra.gmra.mrb[8].mxu1 %v3315_v62  ;;  %v2112_v62 = vld [vmem:[%s4019_s3 + $0x88] sm:$0xff] }
  0xcf   : > { %v2600_v19 = vpack.c.bf16 %v2112_v62, %v2111_v14  ;;  %2577 = vmatpush3.bf16.msra.mxu1 %v2576_v16  ;;  %v2597_v14 = vpack.c.bf16 %v1228_v13, %v1227_v12  ;;  %v2125_v16 = vld [vmem:[%s4019_s3 + $0xf0] sm:$0xff]  ;;  %v2126_v62 = vld [vmem:[%s4019_s3 + $0xf8] sm:$0xff] }
  0xd0   : > { %2578 = vmatprep.subr.bf16.mxu1 %v3055_v15  ;;  %v2621_v18 = vpack.c.bf16 %v2126_v62, %v2125_v16  ;;  %v2149_v12 = vld [vmem:[%s4019_s3 + $0x1b0] sm:$0xff]  ;;  %v2150_v13 = vld [vmem:[%s4019_s3 + $0x1b8] sm:$0xff]  ;;  %v2151_v16 = vld [vmem:[%s4019_s3 + $0x1c0] sm:$0xff] }
  0xd1   : > { %2601 = vmatpush3.bf16.msra.mxu0 %v2600_v19  ;;  %v3057_v19 = vmov 0.0   ;;  %v2152_v62 = vld [vmem:[%s4019_s3 + $0x1c8] sm:$0xff] }
  0xd2   : > { %2602 = vmatprep.subr.bf16.mxu0 %v3055_v15  ;;  %2362 = vmatprep.mubr.msk.f32.mxu1 %vm3056_vm0, %v3057_v19 }
  0xd3   : > { %2580 = vmatpush3.bf16.msra.mxu1 %v2579_v22  ;;  %2397 = vmatprep.mubr.msk.f32.mxu0 %vm3056_vm0, %v3057_v19 }
  0xd4   : > { %2581 = vmatprep.subr.bf16.mxu1 %v3055_v15 }
  0xd5   : > { %2604 = vmatpush3.bf16.msra.mxu0 %v2603_v23 }
  0xd6   : > { %2605 = vmatprep.subr.bf16.mxu0 %v3055_v15 }
  0xd7   : > { %2583 = vmatpush3.bf16.msra.mxu1 %v2582_v28  ;;  %v1196_v28 = vrot.slane %v1179_v45, %v1195_v25  ;;  %v2130_v45 = vld [vmem:[%s4019_s3 + $0x118] sm:$0xff]  ;;  %v2157_v25 = vld [vmem:[%s4019_s3 + $0x1f0] sm:$0xff] }
  0xd8   : > { %2584 = vmatprep.subr.bf16.mxu1 %v3055_v15  ;;  %v2627_v46 = vpack.c.bf16 %v2130_v45, %v2129_v44  ;;  %v2169_v45 = vld [vmem:[%s4019_s3 + $0x250] sm:$0xff] }
  0xd9   : > { %2607 = vmatpush3.bf16.msra.mxu0 %v2606_v29 }
  0xda   : > { %2608 = vmatprep.subr.bf16.mxu0 %v3055_v15 }
  0xdb   : > { %2586 = vmatpush3.bf16.msra.mxu1 %v2585_v34 }
  0xdc   : > { %2587 = vmatprep.subr.bf16.mxu1 %v3055_v15 }
  0xdd   : > { %2610 = vmatpush3.bf16.msra.mxu0 %v2609_v35 }
  0xde   : > { %2611 = vmatprep.subr.bf16.mxu0 %v3055_v15 }
  0xdf   : > { %2589 = vmatpush3.bf16.msra.mxu1 %v2588_v40  ;;  %v2128_v40 = vld [vmem:[%s4019_s3 + $0x108] sm:$0xff] }
  0xe0   : > { %2590 = vmatprep.subr.bf16.mxu1 %v3055_v15  ;;  %v2624_v42 = vpack.c.bf16 %v2128_v40, %v2127_v39  ;;  %v2166_v39 = vld [vmem:[%s4019_s3 + $0x238] sm:$0xff] }
  0xe1   : > { %2613 = vmatpush3.bf16.msra.mxu0 %v2612_v41 }
  0xe2   : > { %2614 = vmatprep.subr.bf16.mxu0 %v3055_v15 }
  0xe3   : > { %2592 = vmatpush3.bf16.msra.mxu1 %v2591_v48  ;;  %v2133_v48 = vld [vmem:[%s4019_s3 + $0x130] sm:$0xff] }
  0xe4   : > { %2593 = vmatprep.subr.bf16.mxu1 %v3055_v15  ;;  %v2633_v52 = vpack.c.bf16 %v2134_v51, %v2133_v48  ;;  %v2173_v51 = vld [vmem:[%s4019_s3 + $0x270] sm:$0xff] }
  0xe5   : > { %2616 = vmatpush3.bf16.msra.mxu0 %v2615_v56  ;;  %v2137_v56 = vld [vmem:[%s4019_s3 + $0x150] sm:$0xff] }
  0xe6   : > { %2617 = vmatprep.subr.bf16.mxu0 %v3055_v15 }
  0xe7   : > { %2595 = vmatpush3.bf16.msra.mxu1 %v2594_v5 }
  0xe8   : > { %2596 = vmatprep.subr.bf16.mxu1 %v3055_v15 }
  0xe9   : > { %2619 = vmatpush3.bf16.msra.mxu0 %v2618_v9  ;;  %v2147_v9 = vld [vmem:[%s4019_s3 + $0x1a0] sm:$0xff] }
  0xea   : > { %2620 = vmatprep.subr.bf16.mxu0 %v3055_v15 }
  0xeb   : > { %2598 = vmatpush3.bf16.msra.mxu1 %v2597_v14  ;;  %v2657_v14 = vpack.c.bf16 %v2150_v13, %v2149_v12  ;;  %v2189_v13 = vld [vmem:[%s4019_s3 + $0x2f0] sm:$0xff] }
  0xed   : > { %2622 = vmatpush3.bf16.msra.mxu0 %v2621_v18  ;;  %v2153_v18 = vld [vmem:[%s4019_s3 + $0x1d0] sm:$0xff] }
  0xee   : > { %2623 = vmatprep.subr.bf16.mxu0 %v3055_v15 }
 0x121   : > { %v727_v53 = vpop.f32.mrb[0].mxu1 }
 0x122   : > { %v1131_v54 = vpop.f32.mrb[0].mxu0  ;;  %v729_v58 = vpop.f32.mrb[1].mxu1 }
 0x123   : > { %v1132_v57 = vadd.f32 %v1131_v54, %v727_v53  ;;  %v1133_v59 = vpop.f32.mrb[1].mxu0  ;;  %v731_v61 = vpop.f32.mrb[2].mxu1  ;;  %v2135_v53 = vld [vmem:[%s4019_s3 + $0x140] sm:$0xff]  ;;  %v2136_v54 = vld [vmem:[%s4019_s3 + $0x148] sm:$0xff] }
 0x124   : > { %v1134_v60 = vadd.f32 %v1133_v59, %v729_v58  ;;  %v1135_v63 = vpop.f32.mrb[2].mxu0  ;;  %v732_v3 = vpop.f32.mrb[3].mxu1  ;;  %v2139_v59 = vld [vmem:[%s4019_s3 + $0x160] sm:$0xff] }
 0x125   : > { %v1201_v2 = vadd.f32 %v1184_v50, %v1132_v57  ;;  %v1136_v4 = vpop.f32.mrb[3].mxu0  ;;  %v2630_v50 = vpack.c.bf16 %v2132_v49, %v2131_v47  ;;  %v2138_v57 = vld [vmem:[%s4019_s3 + $0x158] sm:$0xff]  ;;  %v2141_v63 = vld [vmem:[%s4019_s3 + $0x170] sm:$0xff]  ;;  %v2144_v3 = vld [vmem:[%s4019_s3 + $0x188] sm:$0xff] }
 0x126   : > { %v1202_v8 = vadd.f32 %v1188_v55, %v1134_v60  ;;  %v2636_v55 = vpack.c.bf16 %v2136_v54, %v2135_v53  ;;  %v2639_v58 = vpack.c.bf16 %v2138_v57, %v2137_v56  ;;  %v2140_v60 = vld [vmem:[%s4019_s3 + $0x168] sm:$0xff]  ;;  %v2645_v1 = vpack.c.bf16 %v2142_v0, %v2141_v63  ;;  %v2171_v49 = vld [vmem:[%s4019_s3 + $0x260] sm:$0xff] }
 0x127   : > { %v1205_v10 = vmax.f32 %v1201_v2, 0.0  ;;  %v2642_v61 = vpack.c.bf16 %v2140_v60, %v2139_v59  ;;  %v2143_v2 = vld [vmem:[%s4019_s3 + $0x180] sm:$0xff]  ;;  %v2178_v59 = vld [vmem:[%s4019_s3 + $0x298] sm:$0xff]  ;;  %v2180_v63 = vld [vmem:[%s4019_s3 + $0x2a8] sm:$0xff] }
 0x128   : > { %v1206_v11 = vmax.f32 %v1202_v8, 0.0  ;;  %v2648_v4 = vpack.c.bf16 %v2144_v3, %v2143_v2  ;;  %v2651_v8 = vpack.c.bf16 %v2146_v7, %v2145_v6  ;;  %v2175_v54 = vld [vmem:[%s4019_s3 + $0x280] sm:$0xff]  ;;  %v2182_v2 = vld [vmem:[%s4019_s3 + $0x2b8] sm:$0xff]  ;;  %v2185_v7 = vld [vmem:[%s4019_s3 + $0x2d0] sm:$0xff] }
 0x12a   : > { %v1209_v17 = vmax.f32 %v1205_v10, %v1206_v11  ;;  %v2148_v10 = vld [vmem:[%s4019_s3 + $0x1a8] sm:$0xff] }
 0x12b   : > { %v2654_v11 = vpack.c.bf16 %v2148_v10, %v2147_v9  ;;  %v2187_v10 = vld [vmem:[%s4019_s3 + $0x2e0] sm:$0xff] }
 0x161   : > { %v768_v20 = vpop.f32.mrb[4].mxu1 }
 0x162   : > { %v770_v21 = vpop.f32.mrb[5].mxu1 }
 0x163   : > { %v772_v22 = vpop.f32.mrb[6].mxu1 }
 0x164   : > { %v773_v23 = vpop.f32.mrb[7].mxu1  ;;  %v2155_v22 = vld [vmem:[%s4019_s3 + $0x1e0] sm:$0xff] }
 0x165   : > { %v2156_v23 = vld [vmem:[%s4019_s3 + $0x1e8] sm:$0xff] }
 0x166   : > { %v2666_v24 = vpack.c.bf16 %v2156_v23, %v2155_v22  ;;  %v2194_v22 = vld [vmem:[%s4019_s3 + $0x318] sm:$0xff] }
 0x1a1   : > { %v1172_v27 = vpop.f32.mrb[8].mxu1 }
 0x1a2   : > { %v1173_v29 = vadd.f32 %v1172_v27, %v768_v20  ;;  %v1174_v30 = vpop.f32.mrb[9].mxu1  ;;  %v2154_v20 = vld [vmem:[%s4019_s3 + $0x1d8] sm:$0xff] }
 0x1a3   : > { %v1175_v31 = vadd.f32 %v1174_v30, %v770_v21  ;;  %v1176_v32 = vpop.f32.mrb[10].mxu1  ;;  %v2663_v21 = vpack.c.bf16 %v2154_v20, %v2153_v18 }
 0x1a4   : > { %v1203_v33 = vadd.f32 %v1192_v26, %v1173_v29  ;;  %v1177_v34 = vpop.f32.mrb[11].mxu1  ;;  %v2158_v26 = vld [vmem:[%s4019_s3 + $0x1f8] sm:$0xff]  ;;  %v2160_v29 = vld [vmem:[%s4019_s3 + $0x208] sm:$0xff]  ;;  %v2161_v32 = vld [vmem:[%s4019_s3 + $0x210] sm:$0xff] }
 0x1a5   : > { %v1204_v35 = vadd.f32 %v1196_v28, %v1175_v31  ;;  %v2669_v27 = vpack.c.bf16 %v2158_v26, %v2157_v25  ;;  %v2159_v28 = vld [vmem:[%s4019_s3 + $0x200] sm:$0xff]  ;;  %v2196_v25 = vld [vmem:[%s4019_s3 + $0x328] sm:$0xff] }
 0x1a6   : > { %v1207_v36 = vmax.f32 %v1203_v33, 0.0  ;;  %v2672_v30 = vpack.c.bf16 %v2160_v29, %v2159_v28  ;;  %v2162_v33 = vld [vmem:[%s4019_s3 + $0x218] sm:$0xff]  ;;  %v2199_v29 = vld [vmem:[%s4019_s3 + $0x340] sm:$0xff] }
 0x1a7   : > { %v1208_v37 = vmax.f32 %v1204_v35, 0.0  ;;  %v2675_v34 = vpack.c.bf16 %v2162_v33, %v2161_v32  ;;  %v2163_v35 = vld [vmem:[%s4019_s3 + $0x220] sm:$0xff]  ;;  %v2201_v32 = vld [vmem:[%s4019_s3 + $0x350] sm:$0xff]  ;;  %v2202_v33 = vld [vmem:[%s4019_s3 + $0x358] sm:$0xff] }
 0x1a9   : > { %v1210_v38 = vmax.f32 %v1207_v36, %v1208_v37  ;;  %v2164_v36 = vld [vmem:[%s4019_s3 + $0x228] sm:$0xff] }
 0x1aa   : > { %v2678_v37 = vpack.c.bf16 %v2164_v36, %v2163_v35  ;;  %v2203_v35 = vld [vmem:[%s4019_s3 + $0x360] sm:$0xff]  ;;  %v2204_v36 = vld [vmem:[%s4019_s3 + $0x368] sm:$0xff] }
 0x1ab   : > { %v3674_v41 = vmax.f32 %v1209_v17, %v1210_v38  ;;  %v2660_v17 = vpack.c.bf16 %v2152_v62, %v2151_v16  ;;  %v2165_v38 = vld [vmem:[%s4019_s3 + $0x230] sm:$0xff]  ;;  %v2191_v62 = vld [vmem:[%s4019_s3 + $0x300] sm:$0xff] }
 0x1ac   : > { %v2681_v40 = vpack.c.bf16 %v2166_v39, %v2165_v38  ;;  %v2205_v38 = vld [vmem:[%s4019_s3 + $0x370] sm:$0xff]  ;;  %v2206_v39 = vld [vmem:[%s4019_s3 + $0x378] sm:$0xff] }
 0x1ad   : > { %2363 = vmatmul.mubr.f32.vlgmr.msra.gmra.mrb[12].mxu1 %v3674_v41  ;;  %v1318_v43 = vrot.slane %v3674_v41, 1  ;;  %v1408_v5 = vrot.slane %v3674_v41, 2  ;;  %v1498_v31 = vrot.slane %v3674_v41, 3  ;;  %v1588_v57 = vrot.slane %v3674_v41, 4 }
 0x1ae   : > { %v1678_v20 = vrot.slane %v3674_v41, 5 }
 0x1af   : > { %2398 = vmatmul.mubr.f32.vlgmr.msra.gmra.mrb[4].mxu0 %v1318_v43  ;;  %v2168_v43 = vld [vmem:[%s4019_s3 + $0x248] sm:$0xff] }
 0x1b0   : > { %2625 = vmatpush3.bf16.msra.mxu0 %v2624_v42  ;;  %2432 = vmatprep.mubr.msk.f32.mxu0 %vm3056_vm0, %v3057_v19  ;;  %v2167_v42 = vld [vmem:[%s4019_s3 + $0x240] sm:$0xff] }
 0x1b1   : > { %2626 = vmatprep.subr.bf16.mxu0 %v3055_v15  ;;  %v2684_v44 = vpack.c.bf16 %v2168_v43, %v2167_v42  ;;  %v1768_v42 = vrot.slane %v3674_v41, 6 }
 0x1b4   : > { %2628 = vmatpush3.bf16.msra.mxu0 %v2627_v46  ;;  %v2170_v46 = vld [vmem:[%s4019_s3 + $0x258] sm:$0xff] }
 0x1b5   : > { %2629 = vmatprep.subr.bf16.mxu0 %v3055_v15  ;;  %v2687_v47 = vpack.c.bf16 %v2170_v46, %v2169_v45  ;;  %v1212_v45 = vld [vmem:[%s4020_s4] sm:$0x1] }
 0x1b8   : > { %2631 = vmatpush3.bf16.msra.mxu0 %v2630_v50  ;;  %v2172_v50 = vld [vmem:[%s4019_s3 + $0x268] sm:$0xff] }
 0x1b9   : > { %2632 = vmatprep.subr.bf16.mxu0 %v3055_v15  ;;  %v2690_v48 = vpack.c.bf16 %v2172_v50, %v2171_v49 }
 0x1bc   : > { %2634 = vmatpush3.bf16.msra.mxu0 %v2633_v52  ;;  %v2174_v52 = vld [vmem:[%s4019_s3 + $0x278] sm:$0xff] }
 0x1bd   : > { %2635 = vmatprep.subr.bf16.mxu0 %v3055_v15  ;;  %v2693_v53 = vpack.c.bf16 %v2174_v52, %v2173_v51 }
 0x1c0   : > { %2637 = vmatpush3.bf16.msra.mxu0 %v2636_v55  ;;  %v2176_v55 = vld [vmem:[%s4019_s3 + $0x288] sm:$0xff] }
 0x1c1   : > { %2638 = vmatprep.subr.bf16.mxu0 %v3055_v15  ;;  %v2696_v56 = vpack.c.bf16 %v2176_v55, %v2175_v54 }
 0x1c4   : > { %2640 = vmatpush3.bf16.msra.mxu0 %v2639_v58  ;;  %v2177_v58 = vld [vmem:[%s4019_s3 + $0x290] sm:$0xff] }
 0x1c5   : > { %2641 = vmatprep.subr.bf16.mxu0 %v3055_v15  ;;  %v2699_v60 = vpack.c.bf16 %v2178_v59, %v2177_v58 }
 0x1c8   : > { %2643 = vmatpush3.bf16.msra.mxu0 %v2642_v61  ;;  %v2179_v61 = vld [vmem:[%s4019_s3 + $0x2a0] sm:$0xff] }
 0x1c9   : > { %2644 = vmatprep.subr.bf16.mxu0 %v3055_v15  ;;  %v2702_v0 = vpack.c.bf16 %v2180_v63, %v2179_v61 }
 0x1cc   : > { %2646 = vmatpush3.bf16.msra.mxu0 %v2645_v1  ;;  %v2181_v1 = vld [vmem:[%s4019_s3 + $0x2b0] sm:$0xff] }
 0x1cd   : > { %2647 = vmatprep.subr.bf16.mxu0 %v3055_v15  ;;  %v2705_v3 = vpack.c.bf16 %v2182_v2, %v2181_v1 }
 0x1cf   : > { %2433 = vmatmul.mubr.f32.vlgmr.msra.gmra.mrb[4].mxu0 %v1408_v5  ;;  %v2184_v5 = vld [vmem:[%s4019_s3 + $0x2c8] sm:$0xff] }
 0x1d0   : > { %2649 = vmatpush3.bf16.msra.mxu0 %v2648_v4  ;;  %2467 = vmatprep.mubr.msk.f32.mxu0 %vm3056_vm0, %v3057_v19  ;;  %v2183_v4 = vld [vmem:[%s4019_s3 + $0x2c0] sm:$0xff] }
 0x1d1   : > { %2650 = vmatprep.subr.bf16.mxu0 %v3055_v15  ;;  %v2708_v6 = vpack.c.bf16 %v2184_v5, %v2183_v4 }
 0x1d4   : > { %2652 = vmatpush3.bf16.msra.mxu0 %v2651_v8  ;;  %v2186_v8 = vld [vmem:[%s4019_s3 + $0x2d8] sm:$0xff] }
 0x1d5   : > { %2653 = vmatprep.subr.bf16.mxu0 %v3055_v15  ;;  %v2711_v9 = vpack.c.bf16 %v2186_v8, %v2185_v7 }
 0x1d8   : > { %2655 = vmatpush3.bf16.msra.mxu0 %v2654_v11  ;;  %v2188_v11 = vld [vmem:[%s4019_s3 + $0x2e8] sm:$0xff] }
 0x1d9   : > { %2656 = vmatprep.subr.bf16.mxu0 %v3055_v15  ;;  %v2714_v12 = vpack.c.bf16 %v2188_v11, %v2187_v10 }
 0x1dc   : > { %2658 = vmatpush3.bf16.msra.mxu0 %v2657_v14  ;;  %v2190_v14 = vld [vmem:[%s4019_s3 + $0x2f8] sm:$0xff] }
 0x1dd   : > { %2659 = vmatprep.subr.bf16.mxu0 %v3055_v15  ;;  %v2717_v16 = vpack.c.bf16 %v2190_v14, %v2189_v13 }
 0x1e0   : > { %2661 = vmatpush3.bf16.msra.mxu0 %v2660_v17  ;;  %v2192_v17 = vld [vmem:[%s4019_s3 + $0x308] sm:$0xff] }
 0x1e1   : > { %2662 = vmatprep.subr.bf16.mxu0 %v3055_v15  ;;  %v2720_v18 = vpack.c.bf16 %v2192_v17, %v2191_v62 }
 0x1e4   : > { %2664 = vmatpush3.bf16.msra.mxu0 %v2663_v21  ;;  %v2193_v21 = vld [vmem:[%s4019_s3 + $0x310] sm:$0xff] }
 0x1e5   : > { %2665 = vmatprep.subr.bf16.mxu0 %v3055_v15  ;;  %v2723_v23 = vpack.c.bf16 %v2194_v22, %v2193_v21 }
 0x1e8   : > { %2667 = vmatpush3.bf16.msra.mxu0 %v2666_v24  ;;  %v2195_v24 = vld [vmem:[%s4019_s3 + $0x320] sm:$0xff] }
 0x1e9   : > { %2668 = vmatprep.subr.bf16.mxu0 %v3055_v15  ;;  %v2726_v26 = vpack.c.bf16 %v2196_v25, %v2195_v24 }
 0x1ec   : > { %2670 = vmatpush3.bf16.msra.mxu0 %v2669_v27  ;;  %v2197_v27 = vld [vmem:[%s4019_s3 + $0x330] sm:$0xff] }
 0x1ed   : > { %2671 = vmatprep.subr.bf16.mxu0 %v3055_v15 }
 0x1ef   : > { %2468 = vmatmul.mubr.f32.vlgmr.msra.gmra.mrb[4].mxu0 %v1498_v31 }
 0x1f0   : > { %2673 = vmatpush3.bf16.msra.mxu0 %v2672_v30  ;;  %2502 = vmatprep.mubr.msk.f32.mxu0 %vm3056_vm0, %v3057_v19  ;;  %v2200_v30 = vld [vmem:[%s4019_s3 + $0x348] sm:$0xff] }
 0x1f1   : > { %2674 = vmatprep.subr.bf16.mxu0 %v3055_v15  ;;  %v2732_v31 = vpack.c.bf16 %v2200_v30, %v2199_v29 }
 0x1f4   : > { %2676 = vmatpush3.bf16.msra.mxu0 %v2675_v34  ;;  %v2735_v34 = vpack.c.bf16 %v2202_v33, %v2201_v32 }
 0x1f5   : > { %2677 = vmatprep.subr.bf16.mxu0 %v3055_v15 }
 0x1f8   : > { %2679 = vmatpush3.bf16.msra.mxu0 %v2678_v37  ;;  %v2738_v37 = vpack.c.bf16 %v2204_v36, %v2203_v35 }
 0x1f9   : > { %2680 = vmatprep.subr.bf16.mxu0 %v3055_v15 }
 0x1fc   : > { %2682 = vmatpush3.bf16.msra.mxu0 %v2681_v40  ;;  %v2741_v40 = vpack.c.bf16 %v2206_v39, %v2205_v38 }
 0x1fd   : > { %2683 = vmatprep.subr.bf16.mxu0 %v3055_v15 }
 0x200   : > { %2685 = vmatpush3.bf16.msra.mxu0 %v2684_v44 }
 0x201   : > { %2686 = vmatprep.subr.bf16.mxu0 %v3055_v15 }
 0x204   : > { %2688 = vmatpush3.bf16.msra.mxu0 %v2687_v47 }
 0x205   : > { %2689 = vmatprep.subr.bf16.mxu0 %v3055_v15 }
 0x208   : > { %2691 = vmatpush3.bf16.msra.mxu0 %v2690_v48 }
 0x209   : > { %2692 = vmatprep.subr.bf16.mxu0 %v3055_v15 }
 0x20c   : > { %2694 = vmatpush3.bf16.msra.mxu0 %v2693_v53 }
 0x20d   : > { %2695 = vmatprep.subr.bf16.mxu0 %v3055_v15 }
 0x20f   : > { %2503 = vmatmul.mubr.f32.vlgmr.msra.gmra.mrb[4].mxu0 %v1588_v57 }
 0x210   : > { %2697 = vmatpush3.bf16.msra.mxu0 %v2696_v56  ;;  %2537 = vmatprep.mubr.msk.f32.mxu0 %vm3056_vm0, %v3057_v19 }
 0x211   : > { %2698 = vmatprep.subr.bf16.mxu0 %v3055_v15 }
 0x214   : > { %2700 = vmatpush3.bf16.msra.mxu0 %v2699_v60 }
 0x215   : > { %2701 = vmatprep.subr.bf16.mxu0 %v3055_v15 }
 0x218   : > { %2703 = vmatpush3.bf16.msra.mxu0 %v2702_v0 }
 0x219   : > { %2704 = vmatprep.subr.bf16.mxu0 %v3055_v15 }
 0x21c   : > { %2706 = vmatpush3.bf16.msra.mxu0 %v2705_v3 }
 0x21d   : > { %2707 = vmatprep.subr.bf16.mxu0 %v3055_v15 }
 0x220   : > { %2709 = vmatpush3.bf16.msra.mxu0 %v2708_v6 }
 0x221   : > { %2710 = vmatprep.subr.bf16.mxu0 %v3055_v15 }
 0x224   : > { %2712 = vmatpush3.bf16.msra.mxu0 %v2711_v9 }
 0x225   : > { %2713 = vmatprep.subr.bf16.mxu0 %v3055_v15 }
 0x228   : > { %2715 = vmatpush3.bf16.msra.mxu0 %v2714_v12 }
 0x229   : > { %2716 = vmatprep.subr.bf16.mxu0 %v3055_v15 }
 0x22c   : > { %2718 = vmatpush3.bf16.msra.mxu0 %v2717_v16 }
 0x22d   : > { %2719 = vmatprep.subr.bf16.mxu0 %v3055_v15 }
 0x22f   : > { %2538 = vmatmul.mubr.f32.vlgmr.msra.gmra.mrb[4].mxu0 %v1678_v20 }
 0x230   : > { %2721 = vmatpush3.bf16.msra.mxu0 %v2720_v18  ;;  %2572 = vmatprep.mubr.msk.f32.mxu0 %vm3056_vm0, %v3057_v19  ;;  %v2198_v19 = vld [vmem:[%s4019_s3 + $0x338] sm:$0xff] }
 0x231   : > { %2722 = vmatprep.subr.bf16.mxu0 %v3055_v15  ;;  %v2729_v28 = vpack.c.bf16 %v2198_v19, %v2197_v27 }
 0x234   : > { %2724 = vmatpush3.bf16.msra.mxu0 %v2723_v23 }
 0x235   : > { %2725 = vmatprep.subr.bf16.mxu0 %v3055_v15 }
 0x238   : > { %2727 = vmatpush3.bf16.msra.mxu0 %v2726_v26 }
 0x239   : > { %2728 = vmatprep.subr.bf16.mxu0 %v3055_v15 }
 0x23c   : > { %2730 = vmatpush3.bf16.msra.mxu0 %v2729_v28 }
 0x23d   : > { %2731 = vmatprep.subr.bf16.mxu0 %v3055_v15 }
 0x240   : > { %2733 = vmatpush3.bf16.msra.mxu0 %v2732_v31 }
 0x241   : > { %2734 = vmatprep.subr.bf16.mxu0 %v3055_v15 }
 0x244   : > { %2736 = vmatpush3.bf16.msra.mxu0 %v2735_v34 }
 0x245   : > { %2737 = vmatprep.subr.bf16.mxu0 %v3055_v15 }
 0x248   : > { %2739 = vmatpush3.bf16.msra.mxu0 %v2738_v37 }
 0x249   : > { %2740 = vmatprep.subr.bf16.mxu0 %v3055_v15 }
 0x24c   : > { %2742 = vmatpush3.bf16.msra.mxu0 %v2741_v40 }
 0x24f   : > { %2573 = vmatmul.mubr.f32.vlgmr.msra.gmra.mrb[4].mxu0 %v1768_v42 }
 0x280   : > { %v1295_v43 = vpop.f32.mrb[12].mxu1 }
 0x281   : > { %v2364_v44 = vpop.f32.mrb[13].mxu1  ;;  %v1299_v46 = vadd.f32 %v1295_v43, %v1212_v45 }
 0x322   : > { %v1836_v47 = vpop.f32.mrb[4].mxu0 }
 0x323   : > { %v2744_v49 = vadd.f32 %v1836_v47, %v1299_v46  ;;  %v2574_v15 = vpop.f32.mrb[5].mxu0 }
 0x325   : > { %1842 = vst.msk [vmem:[%s216_s17] sm:$0x1] %vm1841_vm1, %v2744_v49 }
 0x326   : > { %3004 = shalt.err (!%p3001_p3)
}
 0x327   : > { %s3005_s9 = scalar_lea.hbm %s3974_s26, 16  ;;  %s3009_s12 = scalar_lea.hbm %s4021_s5, 32 }
 0x328   : > { %p3006_p4 = scmp.ne.s32.totalorder %s3974_s26, %s3005_s9  ;;  %p3010_p9 = scmp.lt.u32.totalorder %s3974_s26, %s4021_s5 }
 0x329   : > { %p3011_p10 = scmp.lt.u32.totalorder %s3009_s12, %s3005_s9  ;;  %p3013_p12 = scmp.lt.u32.totalorder %s3005_s9, %s3974_s26 }
 0x32a   : > { %p3007_p7 = pnand %p3006_p4, %p3127_p5 }
 0x32b   : > { %p3012_p11 = por %p3011_p10, %p3010_p9 }
 0x32c   : > { %p3008_p8 = pneg %p3007_p7 }
 0x32d   : > { %p3014_p13 = por %p3013_p12, %p3012_p11 }
 0x32f   : > { %p3015_p0 = pnand %p3014_p13, %p3008_p8 }
 0x331   : > { %3018 = shalt.err (!%p3015_p0)
}
 0x332   : > { %2755 = dma.vmem_to_hbm [thread:$0]  (%p3127_p5), %s3976_s23, 16, %s3974_s26, %s1844_s30  }
 0x333 PF: > { %p2761_p1 = scmp.ge.s32.totalorder %s3053_s21, 2  ;;  %s1868_s16 = sand.u32 1, %s3041_s18  }
 0x334   : > { %s1869_s17 = scalar_lea.sflag [#allocation3], %s1868_s16 }
 0x335   : > { %p2758_p2 = pnand %p2761_p1, %p3131_p6 }
 0x337   : > { %3036 = dma.done.wait (!%p2758_p2), %s1869_s17, 16  }
 0x338   : > { %3038 = vsyncadd (!%p2758_p2), %s1869_s17, 4294967280  ;;  %p15_p3 = scmp.ge.s32.totalorder %s3114_s24, 4   ;;  %s4024_s18 = smov %s3045_s19 }
 0x339   : > { %s4025_s19 = smov %s3049_s20  ;;  %s4026_s20 = smov %s3125_s27 }
 0x33a   : > { %s4027_s21 = smov %s3114_s24  ;;  %17 = sbr.rel (!%p15_p3) target bundleno = 3 (0x3), region = 82 }
 0x341   :  { %1873 = vsyncpa [#allocation3], 1 }
 0x342   :  { %1875 = vsyncpa [#allocation3 + $0x1], 1 }

</bundles_post_ra>
